<compile_context>
chip_gen: v7x
topology: tpu7x:2x2x1
jax: 0.10.0
libtpu: 0.0.40
codegen_flags: <defaults>
</compile_context>

<pallas_src>
import math
import numpy as np
import jax
import jax.numpy as jnp
from jax.experimental import pallas as pl
from jax.experimental.pallas import tpu as pltpu

# ----- model config (small, consistent with the module's contract) -----------------
STATE_DIMS = (8, 16, 32)     # per-layer latent dims; x is [batch, sum(STATE_DIMS)]
OUT_DIM = 64                 # output dim of the last transform
TOTAL_DIM = sum(STATE_DIMS)  # 56


def _indices(state_dims):
    idx = [0]
    for d in state_dims:
        idx.append(idx[-1] + d)
    return idx


IDX = _indices(STATE_DIMS)               # [0, 8, 24, 56]
LAYER_OUT = (STATE_DIMS[1], STATE_DIMS[2], OUT_DIM)   # (16, 32, 64)


# ----- Pallas kernel ----------------------------------------------------------------
def decoder_kernel(x_ref, w0_ref, b0_ref, w1_ref, b1_ref, w2_ref, b2_ref, o_ref):
    """Whole 3-layer decoder chain for one [bm, 56] batch tile (batch on sublanes).

    Weights arrive pre-transposed to [in, out]; biases as [1, out] f32.
    Residual adds / ReLU stay in f32; only the MXU operands are cast to compute dtype.
    """
    cdt = w0_ref.dtype                       # compute (matmul input) dtype (f32 or bf16)
    x = x_ref[...]                           # [bm, 56] f32 (natural layout, no transposes)

    # layer 0: zeros + x[:, 0:8]   -> Linear -> ReLU           ([bm, 16])
    h = jnp.dot(x[:, IDX[0]:IDX[1]].astype(cdt), w0_ref[...],
                preferred_element_type=jnp.float32) + b0_ref[...]
    h = jnp.maximum(h, 0.0)

    # layer 1: h + x[:, 8:24]      -> Linear -> ReLU           ([bm, 32])
    h = (h + x[:, IDX[1]:IDX[2]]).astype(cdt)        # f32 add, cast only the MXU operand
    h = jnp.dot(h, w1_ref[...], preferred_element_type=jnp.float32) + b1_ref[...]
    h = jnp.maximum(h, 0.0)

    # layer 2: h + x[:, 24:56]     -> Linear (no activation)   ([bm, 64])
    h = (h + x[:, IDX[2]:IDX[3]]).astype(cdt)
    h = jnp.dot(h, w2_ref[...], preferred_element_type=jnp.float32) + b2_ref[...]

    o_ref[...] = h.astype(o_ref.dtype)


# ----- tile policy ------------------------------------------------------------------
def _pick_bm(batch):
    """Batch-tile (sublane-axis) size.

    Prefer the largest 1024-4096 row tile; split the grid (for v7x megacore / pipelining)
    only when every step still gets >= 1024 rows.  Small / odd batches run as a single
    full-array block, which is always a legal block shape.
    """
    if batch <= 4096:
        for cand in (2048, 1024):
            if batch % cand == 0 and batch // cand >= 2:
                return cand
        return batch                       # one big block (block dim == full array dim)
    for cand in (4096, 2048, 1024, 512, 256, 128):
        if batch % cand == 0:
            return cand
    # large batch with awkward factorization: largest multiple-of-8 divisor <= 4096
    for cand in range(4096, 0, -8):
        if batch % cand == 0:
            return cand
    return batch                           # not divisible by 8 at all: single full block


def _x_block_spec(bm, multi_buffer):
    idx_map = lambda i: (i, 0)
    if multi_buffer and hasattr(pl, "Buffered"):
        try:
            # 3-deep buffering on the pure-DMA x stream (per-step compute ~0 here).
            return pl.BlockSpec((bm, TOTAL_DIM), idx_map, pipeline_mode=pl.Buffered(3))
        except TypeError:
            pass
    return pl.BlockSpec((bm, TOTAL_DIM), idx_map)


# ----- wrapper ----------------------------------------------------------------------
def generative_model_forward(x, params, *, bm=None,
                             compute_dtype=jnp.float32, out_dtype=None):
    """x: [batch, 56] float32. Returns [batch, 64] in `out_dtype` (default float32)."""
    B, D = x.shape
    assert D == TOTAL_DIM
    if out_dtype is None:
        out_dtype = jnp.float32
    if bm is None:
        bm = _pick_bm(B)
    assert B % bm == 0, f"batch {B} not divisible by tile {bm}"
    n_steps = B // bm

    (w0, b0), (w1, b1), (w2, b2) = params

    # Tiny-parameter plumbing only (~11 KB): pre-transpose weights to [in, out] so the
    # kernel computes h = x_slice @ W^T directly; biases as [1, out] f32.
    cdt = jnp.dtype(compute_dtype)
    w0t, w1t, w2t = (jnp.asarray(w).T.astype(cdt) for w in (w0, w1, w2))
    b0r, b1r, b2r = (jnp.asarray(b).reshape(1, -1).astype(jnp.float32)
                     for b in (b0, b1, b2))

    out_itemsize = jnp.dtype(out_dtype).itemsize
    weight_bytes = (sum(int(np.prod(w.shape)) * cdt.itemsize for w in (w0t, w1t, w2t))
                    + sum(int(np.prod(b.shape)) * 4 for b in (b0r, b1r, b2r)))
    flops = 2 * B * sum(di * do for di, do in zip(STATE_DIMS, LAYER_OUT))
    bytes_accessed = B * TOTAL_DIM * 4 + B * OUT_DIM * out_itemsize + weight_bytes
    cost = pl.CostEstimate(flops=flops, transcendentals=0,
                           bytes_accessed=bytes_accessed)

    # VMEM: buffered x / out tiles (lane dim pads to 128) + resident weights + headroom.
    multi_buffer = n_steps >= 3
    x_bufs = 3 if multi_buffer else 2
    vmem_need = (x_bufs * bm * 128 * 4
                 + 2 * bm * 128 * out_itemsize
                 + weight_bytes + (2 << 20))
    vmem_limit = int(min(max(vmem_need, 16 << 20), 48 << 20))   # safe on v5e/v6e/v7x

    rep = lambda shape: pl.BlockSpec(shape, lambda i: (0, 0))   # VMEM-resident operand

    out = pl.pallas_call(
        decoder_kernel,
        out_shape=jax.ShapeDtypeStruct((B, OUT_DIM), out_dtype),
        grid_spec=pl.GridSpec(
            grid=(n_steps,),
            in_specs=[
                _x_block_spec(bm, multi_buffer),                # batch-tiled x [bm, 56]
                rep(w0t.shape), rep(b0r.shape),
                rep(w1t.shape), rep(b1r.shape),
                rep(w2t.shape), rep(b2r.shape),
            ],
            out_specs=pl.BlockSpec((bm, OUT_DIM), lambda i: (i, 0)),
        ),
        compiler_params=pltpu.CompilerParams(
            dimension_semantics=("parallel",),
            vmem_limit_bytes=vmem_limit,
        ),
        cost_estimate=cost,
    )(x, w0t, b0r, w1t, b1r, w2t, b2r)

    return out   # [B, OUT_DIM] — no post-kernel transpose/copy passes


# ----- deterministic parameter init (mimics torch.nn.Linear default) ----------------
def init_params(key):
    params = []
    for d_in, d_out in zip(STATE_DIMS, LAYER_OUT):
        key, kw, kb = jax.random.split(key, 3)
        bound = 1.0 / math.sqrt(d_in)
        w = jax.random.uniform(kw, (d_out, d_in), jnp.float32, -bound, bound)  # torch [out, in]
        b = jax.random.uniform(kb, (d_out,), jnp.float32, -bound, bound)
        params.append((w, b))
    return params


# ----- pure-JAX reference (mirrors the PyTorch forward literally) --------------------
def reference_forward(x, params):
    result = jnp.zeros((STATE_DIMS[0],), jnp.float32)
    for i, (w, b) in enumerate(params):
        inp = x[:, IDX[i]:IDX[i + 1]]
        h = (result + inp) @ w.T + b
        if i < len(params) - 1:       # ReLU on all but the last transform
            h = jnp.maximum(h, 0.0)
        result = h
    return result


if __name__ == "__main__":
    key = jax.random.PRNGKey(0)
    k_x, k_p = jax.random.split(key)
    params = init_params(k_p)

    # main test: B=512 -> single 512-row block (one big tile, no wasted grid steps)
    batch = 512
    x = jax.random.normal(k_x, (batch, TOTAL_DIM), jnp.float32)
    ref = reference_forward(x, params)

    out_f32 = jax.block_until_ready(generative_model_forward(x, params))
    np.testing.assert_allclose(np.asarray(out_f32), np.asarray(ref),
                               rtol=1e-4, atol=5e-4)

    # fast path: bf16 MXU operands + bf16 output (halves the dominant writeback traffic)
    out_fast = jax.block_until_ready(
        generative_model_forward(x, params,
                                 compute_dtype=jnp.bfloat16, out_dtype=jnp.bfloat16))
    np.testing.assert_allclose(np.asarray(out_fast, dtype=np.float32), np.asarray(ref),
                               rtol=5e-2, atol=5e-2)

    # multi-step grid path: B=4096 -> two 2048-row tiles (megacore-parallel on v7x)
    batch2 = 4096
    x2 = jax.random.normal(k_x, (batch2, TOTAL_DIM), jnp.float32)
    ref2 = reference_forward(x2, params)
    out2 = jax.block_until_ready(generative_model_forward(x2, params))
    np.testing.assert_allclose(np.asarray(out2), np.asarray(ref2),
                               rtol=1e-4, atol=5e-4)

    # odd batch (not a multiple of 8) -> single full-array block fallback (legal blocks)
    batch3 = 200
    x3 = jax.random.normal(k_x, (batch3, TOTAL_DIM), jnp.float32)
    ref3 = reference_forward(x3, params)
    out3 = jax.block_until_ready(generative_model_forward(x3, params))
    np.testing.assert_allclose(np.asarray(out3), np.asarray(ref3),
                               rtol=1e-4, atol=5e-4)

    # TODO(synk): `transforms` is abstract in the PyTorch module; concrete Linear(+ReLU)
    # transforms were chosen here (shapes dictated by state_dims / OUT_DIM).
    print("KERNEL_OK")
</pallas_src>

<mosaic_0001>
module attributes {stable_mosaic.version = 11 : i64} {
  func.func @decoder_kernel(%arg0: i32, %arg1: memref<512x56xf32, #tpu.memory_space<vmem>>, %arg2: memref<8x16xf32, #tpu.memory_space<vmem>>, %arg3: memref<1x16xf32, #tpu.memory_space<vmem>>, %arg4: memref<16x32xf32, #tpu.memory_space<vmem>>, %arg5: memref<1x32xf32, #tpu.memory_space<vmem>>, %arg6: memref<32x64xf32, #tpu.memory_space<vmem>>, %arg7: memref<1x64xf32, #tpu.memory_space<vmem>>, %arg8: memref<512x64xf32, #tpu.memory_space<vmem>>) attributes {dimension_semantics = [#tpu.dimension_semantics<parallel>], iteration_bounds = array<i64: 1>, scalar_prefetch = 0 : i64, scratch_operands = 0 : i64, tpu.core_type = #tpu.core_type<tc>, window_params = [{transform_indices = @transform_0, window_bounds = array<i64: 512, 56>}, {pipeline_mode = #tpu.pipeline_mode<synchronous>, transform_indices = @transform_1, window_bounds = array<i64: 8, 16>}, {pipeline_mode = #tpu.pipeline_mode<synchronous>, transform_indices = @transform_2, window_bounds = array<i64: 1, 16>}, {pipeline_mode = #tpu.pipeline_mode<synchronous>, transform_indices = @transform_3, window_bounds = array<i64: 16, 32>}, {pipeline_mode = #tpu.pipeline_mode<synchronous>, transform_indices = @transform_4, window_bounds = array<i64: 1, 32>}, {pipeline_mode = #tpu.pipeline_mode<synchronous>, transform_indices = @transform_5, window_bounds = array<i64: 32, 64>}, {pipeline_mode = #tpu.pipeline_mode<synchronous>, transform_indices = @transform_6, window_bounds = array<i64: 1, 64>}, {transform_indices = @transform_7, window_bounds = array<i64: 512, 64>}]} {
    %c0 = arith.constant 0 : index
    %c0_0 = arith.constant 0 : index
    %0 = vector.load %arg1[%c0, %c0_0] : memref<512x56xf32, #tpu.memory_space<vmem>>, vector<512x56xf32>
    %1 = vector.extract_strided_slice %0 {offsets = [0, 0], sizes = [512, 8], strides = [1, 1]} : vector<512x56xf32> to vector<512x8xf32>
    %c0_1 = arith.constant 0 : index
    %c0_2 = arith.constant 0 : index
    %2 = vector.load %arg2[%c0_1, %c0_2] : memref<8x16xf32, #tpu.memory_space<vmem>>, vector<8x16xf32>
    %cst = arith.constant dense<0.000000e+00> : vector<512x16xf32>
    %3 = tpu.matmul %1, %2, %cst {dimension_numbers = #tpu.dot_dimension_numbers<[1], [0], [0], [1], [0, 0, 1, 1], [], []>} : vector<512x8xf32>, vector<8x16xf32>, vector<512x16xf32> -> vector<512x16xf32>
    %c0_3 = arith.constant 0 : index
    %c0_4 = arith.constant 0 : index
    %4 = vector.load %arg3[%c0_3, %c0_4] : memref<1x16xf32, #tpu.memory_space<vmem>>, vector<1x16xf32>
    %5 = vector.broadcast %4 : vector<1x16xf32> to vector<512x16xf32>
    %6 = arith.addf %3, %5 : vector<512x16xf32>
    %cst_5 = arith.constant 0.000000e+00 : f32
    %7 = vector.broadcast %cst_5 : f32 to vector<512x16xf32>
    %8 = arith.maximumf %6, %7 : vector<512x16xf32>
    %9 = vector.extract_strided_slice %0 {offsets = [0, 8], sizes = [512, 16], strides = [1, 1]} : vector<512x56xf32> to vector<512x16xf32>
    %10 = arith.addf %8, %9 : vector<512x16xf32>
    %c0_6 = arith.constant 0 : index
    %c0_7 = arith.constant 0 : index
    %11 = vector.load %arg4[%c0_6, %c0_7] : memref<16x32xf32, #tpu.memory_space<vmem>>, vector<16x32xf32>
    %cst_8 = arith.constant dense<0.000000e+00> : vector<512x32xf32>
    %12 = tpu.matmul %10, %11, %cst_8 {dimension_numbers = #tpu.dot_dimension_numbers<[1], [0], [0], [1], [0, 0, 1, 1], [], []>} : vector<512x16xf32>, vector<16x32xf32>, vector<512x32xf32> -> vector<512x32xf32>
    %c0_9 = arith.constant 0 : index
    %c0_10 = arith.constant 0 : index
    %13 = vector.load %arg5[%c0_9, %c0_10] : memref<1x32xf32, #tpu.memory_space<vmem>>, vector<1x32xf32>
    %14 = vector.broadcast %13 : vector<1x32xf32> to vector<512x32xf32>
    %15 = arith.addf %12, %14 : vector<512x32xf32>
    %cst_11 = arith.constant 0.000000e+00 : f32
    %16 = vector.broadcast %cst_11 : f32 to vector<512x32xf32>
    %17 = arith.maximumf %15, %16 : vector<512x32xf32>
    %18 = vector.extract_strided_slice %0 {offsets = [0, 24], sizes = [512, 32], strides = [1, 1]} : vector<512x56xf32> to vector<512x32xf32>
    %19 = arith.addf %17, %18 : vector<512x32xf32>
    %c0_12 = arith.constant 0 : index
    %c0_13 = arith.constant 0 : index
    %20 = vector.load %arg6[%c0_12, %c0_13] : memref<32x64xf32, #tpu.memory_space<vmem>>, vector<32x64xf32>
    %cst_14 = arith.constant dense<0.000000e+00> : vector<512x64xf32>
    %21 = tpu.matmul %19, %20, %cst_14 {dimension_numbers = #tpu.dot_dimension_numbers<[1], [0], [0], [1], [0, 0, 1, 1], [], []>} : vector<512x32xf32>, vector<32x64xf32>, vector<512x64xf32> -> vector<512x64xf32>
    %c0_15 = arith.constant 0 : index
    %c0_16 = arith.constant 0 : index
    %22 = vector.load %arg7[%c0_15, %c0_16] : memref<1x64xf32, #tpu.memory_space<vmem>>, vector<1x64xf32>
    %23 = vector.broadcast %22 : vector<1x64xf32> to vector<512x64xf32>
    %24 = arith.addf %21, %23 : vector<512x64xf32>
    %c0_17 = arith.constant 0 : index
    %c0_18 = arith.constant 0 : index
    %25 = vector.load %arg8[%c0_17, %c0_18] : memref<512x64xf32, #tpu.memory_space<vmem>>, vector<512x64xf32>
    tpu.vector_store %arg8[%c0_17, %c0_18], %24 {strides = array<i32>} : memref<512x64xf32, #tpu.memory_space<vmem>>, vector<512x64xf32>,
    return
  }
  func.func @transform_0(%arg0: i32) -> (i32, i32) {
    %c0_i32 = arith.constant 0 : i32
    %c0_i32_0 = arith.constant 0 : i32
    return %arg0, %c0_i32 : i32, i32
  }
  func.func @transform_1(%arg0: i32) -> (i32, i32) {
    %c0_i32 = arith.constant 0 : i32
    %c0_i32_0 = arith.constant 0 : i32
    %c0_i32_1 = arith.constant 0 : i32
    return %c0_i32, %c0_i32_0 : i32, i32
  }
  func.func @transform_2(%arg0: i32) -> (i32, i32) {
    %c0_i32 = arith.constant 0 : i32
    %c0_i32_0 = arith.constant 0 : i32
    %c0_i32_1 = arith.constant 0 : i32
    return %c0_i32, %c0_i32_0 : i32, i32
  }
  func.func @transform_3(%arg0: i32) -> (i32, i32) {
    %c0_i32 = arith.constant 0 : i32
    %c0_i32_0 = arith.constant 0 : i32
    %c0_i32_1 = arith.constant 0 : i32
    return %c0_i32, %c0_i32_0 : i32, i32
  }
  func.func @transform_4(%arg0: i32) -> (i32, i32) {
    %c0_i32 = arith.constant 0 : i32
    %c0_i32_0 = arith.constant 0 : i32
    %c0_i32_1 = arith.constant 0 : i32
    return %c0_i32, %c0_i32_0 : i32, i32
  }
  func.func @transform_5(%arg0: i32) -> (i32, i32) {
    %c0_i32 = arith.constant 0 : i32
    %c0_i32_0 = arith.constant 0 : i32
    %c0_i32_1 = arith.constant 0 : i32
    return %c0_i32, %c0_i32_0 : i32, i32
  }
  func.func @transform_6(%arg0: i32) -> (i32, i32) {
    %c0_i32 = arith.constant 0 : i32
    %c0_i32_0 = arith.constant 0 : i32
    %c0_i32_1 = arith.constant 0 : i32
    return %c0_i32, %c0_i32_0 : i32, i32
  }
  func.func @transform_7(%arg0: i32) -> (i32, i32) {
    %c0_i32 = arith.constant 0 : i32
    %c0_i32_0 = arith.constant 0 : i32
    return %arg0, %c0_i32 : i32, i32
  }
}

</mosaic_0001>

<bundles_post_ra>
// kernel: tpu_custom_call.1
= control target key start
LH: loop header
LB: loop body
LE: loop exit
PB: predicated region body
PF: predicated region fallthrough
CT: control target
= control target key end

     0   :  { %vm98_vm0 = vcmask 64512   ;;  %s3273_s10 = smov 120   ;;  %vm1005_vm1 = vcmask 130048   ;;  %vm1914_vm2 = vcmask 261120   ;;  %vm2492_vm3 = vcmask 523264   ;;  %s4961_s1 = inlined_call_operand.vmem [shape: f32[8,16], index: 1, kind: input, shape index: {}]   ;;  %s4962_s0 = inlined_call_operand.vmem [shape: f32[512,56], index: 0, kind: input, shape index: {}]   ;;  %s4963_s3 = inlined_call_operand.vmem [shape: f32[16,32], index: 3, kind: input, shape index: {}]   ;;  %s4964_s2 = inlined_call_operand.vmem [shape: f32[1,16], index: 2, kind: input, shape index: {}]   ;;  %s4965_s5 = inlined_call_operand.vmem [shape: f32[32,64], index: 5, kind: input, shape index: {}]   ;;  %s4966_s4 = inlined_call_operand.vmem [shape: f32[1,32], index: 4, kind: input, shape index: {}]   ;;  %s4967_s6 = inlined_call_operand.vmem [shape: f32[1,64], index: 6, kind: input, shape index: {}]   ;;  %s4968_s7 = inlined_call_operand.vmem [shape: f32[512,64], index: 7, kind: output, shape index: {}]  }
   0x1   :  { %v90_v0 = vld [vmem:[%s4961_s1] sm:$0xff]  ;;  %v3326_v2 = vld [vmem:[%s4962_s0 + $0x8] sm:$0xff]  ;;  %v3333_v3 = vld [vmem:[%s4962_s0 + $0x10] sm:$0xff] }
   0x2   :  { %v3321_v1 = vld [vmem:[%s4962_s0] sm:$0xff]  ;;  %2955 = vmatprep.subr.mxu0 %v90_v0  ;;  %3269 = vmatprep.subr.mxu1 %v90_v0  ;;  %v3342_v4 = vld [vmem:[%s4962_s0 + $0x18] sm:$0xff]  ;;  %v3360_v6 = vld [vmem:[%s4962_s0 + $0x28] sm:$0xff] }
   0x3   :  { %2957 = vmatprep.mubr.msk.f32.mxu0 %vm98_vm0, %v3321_v1  ;;  %2956 = vmatpush3.msra.mxu0 %v90_v0  ;;  %v3349_v5 = vld [vmem:[%s4962_s0 + $0x20] sm:$0xff]  ;;  %v3367_v7 = vld [vmem:[%s4962_s0 + $0x30] sm:$0xff]  ;;  %v3381_v9 = vld [vmem:[%s4962_s0 + $0x108] sm:$0xff] }
   0x4   :  { %2958 = vmatmul.mubr.msk.f32.vlgmr.msra.gmra.mrb[0].mxu0 %vm98_vm0, %v3326_v2  ;;  %3270 = vmatpush3.msra.mxu1 %v90_v0  ;;  %v3376_v8 = vld [vmem:[%s4962_s0 + $0x100] sm:$0xff]  ;;  %v3386_v10 = vld [vmem:[%s4962_s0 + $0x110] sm:$0xff]  ;;  %v3393_v11 = vld [vmem:[%s4962_s0 + $0x38] sm:$0xff] }
   0x5   :  { %2960 = vmatprep.mubr.msk.f32.mxu0 %vm98_vm0, %v3333_v3  ;;  %740 = vrot.lane.b32.xlu0 %v3321_v1, %s3273_s10  ;;  %v3400_v12 = vld [vmem:[%s4962_s0 + $0x40] sm:$0xff]  ;;  %v3411_v13 = vld [vmem:[%s4962_s0 + $0x118] sm:$0xff]  ;;  %v3427_v15 = vld [vmem:[%s4962_s0 + $0x48] sm:$0xff] }
   0x6   :  { %744 = vrot.lane.b32.xlu1 %v3333_v3, %s3273_s10  ;;  %3005 = vmatprep.mubr.msk.f32.mxu1 %vm98_vm0, %v3376_v8  ;;  %v3420_v14 = vld [vmem:[%s4962_s0 + $0x120] sm:$0xff]  ;;  %v3432_v16 = vld [vmem:[%s4962_s0 + $0x50] sm:$0xff]  ;;  %v3443_v17 = vld [vmem:[%s4962_s0 + $0x128] sm:$0xff] }
   0x7   :  { %3006 = vmatmul.mubr.msk.f32.vlgmr.msra.gmra.mrb[0].mxu1 %vm98_vm0, %v3381_v9  ;;  %v3452_v18 = vld [vmem:[%s4962_s0 + $0x130] sm:$0xff]  ;;  %v3459_v19 = vld [vmem:[%s4962_s0 + $0x58] sm:$0xff]  ;;  %v3464_v20 = vld [vmem:[%s4962_s0 + $0x60] sm:$0xff] }
   0x8   :  { %2961 = vmatmul.mubr.msk.f32.gmra.mrb[2].mxu0 %vm98_vm0, %v3342_v4  ;;  %3008 = vmatprep.mubr.msk.f32.mxu1 %vm98_vm0, %v3386_v10  ;;  %4994 = vst [vmem:[#allocation2_spill] sm:$0xff] %v3452_v18  ;;  %v996_v21 = vld [vmem:[%s4963_s3] sm:$0xff]  ;;  %v3478_v22 = vld [vmem:[%s4962_s0 + $0x138] sm:$0xff]  ;;  %v997_v23 = vld [vmem:[%s4963_s3 + $0x8] sm:$0xff] }
   0x9   :  { %2963 = vmatprep.mubr.msk.f32.mxu0 %vm98_vm0, %v3349_v5  ;;  %742 = vrot.lane.b32.xlu0 %v3326_v2, %s3273_s10  ;;  %v3490_v24 = vld [vmem:[%s4962_s0 + $0x140] sm:$0xff]  ;;  %v3257_v25 = vpack.c.bf16 %v997_v23, %v996_v21  ;;  %v3497_v26 = vld [vmem:[%s4962_s0 + $0x68] sm:$0xff]  ;;  %v3502_v27 = vld [vmem:[%s4962_s0 + $0x70] sm:$0xff] }
   0xa   :  { %746 = vrot.lane.b32.xlu1 %v3342_v4, %s3273_s10  ;;  %4995 = vst [vmem:[#allocation3_spill] sm:$0xff] %v3490_v24  ;;  %v3513_v28 = vld [vmem:[%s4962_s0 + $0x148] sm:$0xff]  ;;  %v3522_v29 = vld [vmem:[%s4962_s0 + $0x150] sm:$0xff]  ;;  %v3529_v30 = vld [vmem:[%s4962_s0 + $0x78] sm:$0xff] }
   0xb   :  { %3009 = vmatmul.mubr.msk.f32.gmra.mrb[2].mxu1 %vm98_vm0, %v3411_v13  ;;  %4996 = vst [vmem:[#allocation4_spill] sm:$0xff] %v3513_v28  ;;  %4997 = vst [vmem:[#allocation5_spill] sm:$0xff] %v3522_v29  ;;  %3258 = vmatprep.subr.bf16.mxu1 %v3257_v25  ;;  %v3534_v31 = vld [vmem:[%s4962_s0 + $0x80] sm:$0xff]  ;;  %v3545_v32 = vld [vmem:[%s4962_s0 + $0x158] sm:$0xff] }
   0xc   :  { %2964 = vmatmul.mubr.msk.f32.gmra.mrb[4].mxu0 %vm98_vm0, %v3360_v6  ;;  %3011 = vmatprep.mubr.msk.f32.mxu1 %vm98_vm0, %v3420_v14  ;;  %4998 = vst [vmem:[#allocation6_spill] sm:$0xff] %v3545_v32  ;;  %v3554_v33 = vld [vmem:[%s4962_s0 + $0x160] sm:$0xff]  ;;  %v3561_v34 = vld [vmem:[%s4962_s0 + $0x88] sm:$0xff]  ;;  %v3566_v35 = vld [vmem:[%s4962_s0 + $0x90] sm:$0xff] }
   0xd   :  { %2966 = vmatprep.mubr.msk.f32.mxu0 %vm98_vm0, %v3367_v7  ;;  %748 = vrot.lane.b32.xlu0 %v3349_v5, %s3273_s10  ;;  %4999 = vst [vmem:[#allocation7_spill] sm:$0xff] %v3554_v33  ;;  %v3577_v36 = vld [vmem:[%s4962_s0 + $0x168] sm:$0xff]  ;;  %v3586_v37 = vld [vmem:[%s4962_s0 + $0x170] sm:$0xff]  ;;  %v3593_v38 = vld [vmem:[%s4962_s0 + $0x98] sm:$0xff] }
   0xe   :  { %750 = vrot.lane.b32.xlu1 %v3360_v6, %s3273_s10  ;;  %3260 = vmatpush3.bf16.msra.mxu1 %v3257_v25  ;;  %5000 = vst [vmem:[#allocation8_spill] sm:$0xff] %v3577_v36  ;;  %5001 = vst [vmem:[#allocation9_spill] sm:$0xff] %v3586_v37  ;;  %v3598_v39 = vld [vmem:[%s4962_s0 + $0xa0] sm:$0xff]  ;;  %v3609_v40 = vld [vmem:[%s4962_s0 + $0x178] sm:$0xff] }
   0xf   :  { %3012 = vmatmul.mubr.msk.f32.gmra.mrb[4].mxu1 %vm98_vm0, %v3443_v17  ;;  %5002 = vst [vmem:[#allocation10_spill] sm:$0xff] %v3609_v40  ;;  %v3618_v41 = vld [vmem:[%s4962_s0 + $0x180] sm:$0xff]  ;;  %v3625_v42 = vld [vmem:[%s4962_s0 + $0xa8] sm:$0xff]  ;;  %v3630_v43 = vld [vmem:[%s4962_s0 + $0xb0] sm:$0xff] }
  0x10   :  { %2967 = vmatmul.mubr.msk.f32.gmra.mrb[6].mxu0 %vm98_vm0, %v3393_v11  ;;  %3014 = vmatprep.mubr.msk.f32.mxu1 %vm98_vm0, %v3452_v18  ;;  %5003 = vst [vmem:[#allocation11_spill] sm:$0xff] %v3618_v41  ;;  %v3641_v44 = vld [vmem:[%s4962_s0 + $0x188] sm:$0xff]  ;;  %v3650_v45 = vld [vmem:[%s4962_s0 + $0x190] sm:$0xff]  ;;  %v3657_v46 = vld [vmem:[%s4962_s0 + $0xb8] sm:$0xff] }
  0x11   :  { %2969 = vmatprep.mubr.msk.f32.mxu0 %vm98_vm0, %v3400_v12  ;;  %752 = vrot.lane.b32.xlu0 %v3367_v7, %s3273_s10  ;;  %5004 = vst [vmem:[#allocation12_spill] sm:$0xff] %v3641_v44  ;;  %5005 = vst [vmem:[#allocation13_spill] sm:$0xff] %v3650_v45  ;;  %v3662_v47 = vld [vmem:[%s4962_s0 + $0xc0] sm:$0xff]  ;;  %v3673_v48 = vld [vmem:[%s4962_s0 + $0x198] sm:$0xff] }
  0x12   :  { %754 = vrot.lane.b32.xlu1 %v3393_v11, %s3273_s10  ;;  %5006 = vst [vmem:[#allocation14_spill] sm:$0xff] %v3673_v48  ;;  %v3682_v49 = vld [vmem:[%s4962_s0 + $0x1a0] sm:$0xff]  ;;  %v3689_v50 = vld [vmem:[%s4962_s0 + $0xc8] sm:$0xff]  ;;  %v3694_v51 = vld [vmem:[%s4962_s0 + $0xd0] sm:$0xff] }
  0x13   :  { %3015 = vmatmul.mubr.msk.f32.gmra.mrb[6].mxu1 %vm98_vm0, %v3478_v22  ;;  %5007 = vst [vmem:[#allocation15_spill] sm:$0xff] %v3682_v49  ;;  %v3705_v52 = vld [vmem:[%s4962_s0 + $0x1a8] sm:$0xff]  ;;  %v3714_v53 = vld [vmem:[%s4962_s0 + $0x1b0] sm:$0xff]  ;;  %v3721_v54 = vld [vmem:[%s4962_s0 + $0xd8] sm:$0xff] }
  0x14   :  { %2970 = vmatmul.mubr.msk.f32.gmra.mrb[8].mxu0 %vm98_vm0, %v3427_v15  ;;  %3017 = vmatprep.mubr.msk.f32.mxu1 %vm98_vm0, %v3490_v24  ;;  %5008 = vst [vmem:[#allocation16_spill] sm:$0xff] %v3705_v52  ;;  %5009 = vst [vmem:[#allocation17_spill] sm:$0xff] %v3714_v53  ;;  %v3726_v55 = vld [vmem:[%s4962_s0 + $0xe0] sm:$0xff]  ;;  %v3737_v56 = vld [vmem:[%s4962_s0 + $0x1b8] sm:$0xff] }
  0x15   :  { %2972 = vmatprep.mubr.msk.f32.mxu0 %vm98_vm0, %v3432_v16  ;;  %756 = vrot.lane.b32.xlu0 %v3400_v12, %s3273_s10  ;;  %5010 = vst [vmem:[#allocation18_spill] sm:$0xff] %v3737_v56  ;;  %v3746_v57 = vld [vmem:[%s4962_s0 + $0x1c0] sm:$0xff]  ;;  %v3753_v58 = vld [vmem:[%s4962_s0 + $0xe8] sm:$0xff]  ;;  %v3758_v59 = vld [vmem:[%s4962_s0 + $0xf0] sm:$0xff] }
  0x16   :  { %758 = vrot.lane.b32.xlu1 %v3427_v15, %s3273_s10  ;;  %5011 = vst [vmem:[#allocation19_spill] sm:$0xff] %v3746_v57  ;;  %v3769_v60 = vld [vmem:[%s4962_s0 + $0x1c8] sm:$0xff]  ;;  %v3778_v61 = vld [vmem:[%s4962_s0 + $0x1d0] sm:$0xff]  ;;  %v3785_v62 = vld [vmem:[%s4962_s0 + $0xf8] sm:$0xff] }
  0x17   :  { %3018 = vmatmul.mubr.msk.f32.gmra.mrb[8].mxu1 %vm98_vm0, %v3513_v28  ;;  %5012 = vst [vmem:[#allocation20_spill] sm:$0xff] %v3769_v60  ;;  %5013 = vst [vmem:[#allocation21_spill] sm:$0xff] %v3778_v61  ;;  %v3796_v63 = vld [vmem:[%s4962_s0 + $0x1d8] sm:$0xff]  ;;  %v3805_v0 = vld [vmem:[%s4962_s0 + $0x1e0] sm:$0xff] }
  0x18   :  { %2973 = vmatmul.mubr.msk.f32.gmra.mrb[10].mxu0 %vm98_vm0, %v3459_v19  ;;  %3020 = vmatprep.mubr.msk.f32.mxu1 %vm98_vm0, %v3522_v29  ;;  %5014 = vst [vmem:[#allocation22_spill] sm:$0xff] %v3796_v63  ;;  %5015 = vst [vmem:[#allocation23_spill] sm:$0xff] %v3805_v0  ;;  %v3816_v21 = vld [vmem:[%s4962_s0 + $0x1e8] sm:$0xff]  ;;  %v3823_v23 = vld [vmem:[%s4962_s0 + $0x1f0] sm:$0xff] }
  0x19   :  { %2975 = vmatprep.mubr.msk.f32.mxu0 %vm98_vm0, %v3464_v20  ;;  %760 = vrot.lane.b32.xlu0 %v3432_v16, %s3273_s10  ;;  %5016 = vst [vmem:[#allocation24_spill] sm:$0xff] %v3816_v21  ;;  %5017 = vst [vmem:[#allocation25_spill] sm:$0xff] %v3823_v23  ;;  %v3834_v25 = vld [vmem:[%s4962_s0 + $0x1f8] sm:$0xff]  ;;  %s3274_s0 = smov 104  }
  0x1a   :  { %762 = vrot.lane.b32.xlu1 %v3459_v19, %s3273_s10  ;;  %5018 = vst [vmem:[#allocation26_spill] sm:$0xff] %v3834_v25 }
  0x1b   :  { %3021 = vmatmul.mubr.msk.f32.gmra.mrb[10].mxu1 %vm98_vm0, %v3545_v32 }
  0x1c   :  { %2976 = vmatmul.mubr.msk.f32.gmra.mrb[12].mxu0 %vm98_vm0, %v3497_v26  ;;  %3023 = vmatprep.mubr.msk.f32.mxu1 %vm98_vm0, %v3554_v33 }
  0x1d   :  { %2978 = vmatprep.mubr.msk.f32.mxu0 %vm98_vm0, %v3502_v27  ;;  %764 = vrot.lane.b32.xlu0 %v3464_v20, %s3273_s10 }
  0x1e   :  { %766 = vrot.lane.b32.xlu1 %v3497_v26, %s3273_s10 }
  0x1f   :  { %3024 = vmatmul.mubr.msk.f32.gmra.mrb[12].mxu1 %vm98_vm0, %v3577_v36 }
  0x20   :  { %2979 = vmatmul.mubr.msk.f32.gmra.mrb[14].mxu0 %vm98_vm0, %v3529_v30  ;;  %3026 = vmatprep.mubr.msk.f32.mxu1 %vm98_vm0, %v3586_v37 }
  0x21   :  { %2981 = vmatprep.mubr.msk.f32.mxu0 %vm98_vm0, %v3534_v31  ;;  %768 = vrot.lane.b32.xlu0 %v3502_v27, %s3273_s10 }
  0x22   :  { %770 = vrot.lane.b32.xlu1 %v3529_v30, %s3273_s10 }
  0x23   :  { %3027 = vmatmul.mubr.msk.f32.gmra.mrb[14].mxu1 %vm98_vm0, %v3609_v40 }
  0x24   :  { %2982 = vmatmul.mubr.msk.f32.gmra.mrb[16].mxu0 %vm98_vm0, %v3561_v34  ;;  %3029 = vmatprep.mubr.msk.f32.mxu1 %vm98_vm0, %v3618_v41 }
  0x25   :  { %2984 = vmatprep.mubr.msk.f32.mxu0 %vm98_vm0, %v3566_v35  ;;  %772 = vrot.lane.b32.xlu0 %v3534_v31, %s3273_s10 }
  0x26   :  { %774 = vrot.lane.b32.xlu1 %v3561_v34, %s3273_s10 }
  0x27   :  { %3030 = vmatmul.mubr.msk.f32.gmra.mrb[16].mxu1 %vm98_vm0, %v3641_v44 }
  0x28   :  { %2985 = vmatmul.mubr.msk.f32.gmra.mrb[18].mxu0 %vm98_vm0, %v3593_v38  ;;  %3032 = vmatprep.mubr.msk.f32.mxu1 %vm98_vm0, %v3650_v45 }
  0x29   :  { %2987 = vmatprep.mubr.msk.f32.mxu0 %vm98_vm0, %v3598_v39  ;;  %776 = vrot.lane.b32.xlu0 %v3566_v35, %s3273_s10 }
  0x2a   :  { %778 = vrot.lane.b32.xlu1 %v3593_v38, %s3273_s10 }
  0x2b   :  { %3033 = vmatmul.mubr.msk.f32.gmra.mrb[18].mxu1 %vm98_vm0, %v3673_v48 }
  0x2c   :  { %2988 = vmatmul.mubr.msk.f32.gmra.mrb[20].mxu0 %vm98_vm0, %v3625_v42  ;;  %3035 = vmatprep.mubr.msk.f32.mxu1 %vm98_vm0, %v3682_v49 }
  0x2d   :  { %2990 = vmatprep.mubr.msk.f32.mxu0 %vm98_vm0, %v3630_v43  ;;  %780 = vrot.lane.b32.xlu0 %v3598_v39, %s3273_s10 }
  0x2e   :  { %782 = vrot.lane.b32.xlu1 %v3625_v42, %s3273_s10 }
  0x2f   :  { %3036 = vmatmul.mubr.msk.f32.gmra.mrb[20].mxu1 %vm98_vm0, %v3705_v52 }
  0x30   :  { %2991 = vmatmul.mubr.msk.f32.gmra.mrb[22].mxu0 %vm98_vm0, %v3657_v46  ;;  %3038 = vmatprep.mubr.msk.f32.mxu1 %vm98_vm0, %v3714_v53 }
  0x31   :  { %2993 = vmatprep.mubr.msk.f32.mxu0 %vm98_vm0, %v3662_v47  ;;  %784 = vrot.lane.b32.xlu0 %v3630_v43, %s3273_s10 }
  0x32   :  { %786 = vrot.lane.b32.xlu1 %v3657_v46, %s3273_s10 }
  0x33   :  { %3039 = vmatmul.mubr.msk.f32.gmra.mrb[22].mxu1 %vm98_vm0, %v3737_v56 }
  0x34   :  { %2994 = vmatmul.mubr.msk.f32.gmra.mrb[24].mxu0 %vm98_vm0, %v3689_v50  ;;  %3041 = vmatprep.mubr.msk.f32.mxu1 %vm98_vm0, %v3746_v57 }
  0x35   :  { %2996 = vmatprep.mubr.msk.f32.mxu0 %vm98_vm0, %v3694_v51  ;;  %788 = vrot.lane.b32.xlu0 %v3662_v47, %s3273_s10 }
  0x36   :  { %790 = vrot.lane.b32.xlu1 %v3689_v50, %s3273_s10 }
  0x37   :  { %3042 = vmatmul.mubr.msk.f32.gmra.mrb[24].mxu1 %vm98_vm0, %v3769_v60 }
  0x38   :  { %2997 = vmatmul.mubr.msk.f32.gmra.mrb[26].mxu0 %vm98_vm0, %v3721_v54  ;;  %3044 = vmatprep.mubr.msk.f32.mxu1 %vm98_vm0, %v3778_v61 }
  0x39   :  { %2999 = vmatprep.mubr.msk.f32.mxu0 %vm98_vm0, %v3726_v55  ;;  %792 = vrot.lane.b32.xlu0 %v3694_v51, %s3273_s10 }
  0x3a   :  { %794 = vrot.lane.b32.xlu1 %v3721_v54, %s3273_s10 }
  0x3b   :  { %3045 = vmatmul.mubr.msk.f32.gmra.mrb[26].mxu1 %vm98_vm0, %v3796_v63 }
  0x3c   :  { %3000 = vmatmul.mubr.msk.f32.gmra.mrb[28].mxu0 %vm98_vm0, %v3753_v58  ;;  %3047 = vmatprep.mubr.msk.f32.mxu1 %vm98_vm0, %v3805_v0 }
  0x3d   :  { %3002 = vmatprep.mubr.msk.f32.mxu0 %vm98_vm0, %v3758_v59  ;;  %796 = vrot.lane.b32.xlu0 %v3726_v55, %s3273_s10 }
  0x3e   :  { %798 = vrot.lane.b32.xlu1 %v3753_v58, %s3273_s10 }
  0x3f   :  { %3048 = vmatmul.mubr.msk.f32.gmra.mrb[28].mxu1 %vm98_vm0, %v3816_v21 }
  0x40   :  { %3003 = vmatmul.mubr.msk.f32.gmra.mrb[30].mxu0 %vm98_vm0, %v3785_v62  ;;  %3050 = vmatprep.mubr.msk.f32.mxu1 %vm98_vm0, %v3823_v23 }
  0x41   :  { %800 = vrot.lane.b32.xlu0 %v3758_v59, %s3273_s10 }
  0x42   :  { %802 = vrot.lane.b32.xlu1 %v3785_v62, %s3273_s10 }
  0x43   :  { %3051 = vmatmul.mubr.msk.f32.gmra.mrb[30].mxu1 %vm98_vm0, %v3834_v25 }
  0x45   :  { %804 = vrot.lane.b32.xlu0 %v3376_v8, %s3273_s10 }
  0x46   :  { %806 = vrot.lane.b32.xlu1 %v3381_v9, %s3273_s10 }
  0x49   :  { %808 = vrot.lane.b32.xlu0 %v3386_v10, %s3273_s10 }
  0x4a   :  { %810 = vrot.lane.b32.xlu1 %v3411_v13, %s3273_s10 }
  0x4d   :  { %812 = vrot.lane.b32.xlu0 %v3420_v14, %s3273_s10 }
  0x4e   :  { %814 = vrot.lane.b32.xlu1 %v3443_v17, %s3273_s10 }
  0x51   :  { %816 = vrot.lane.b32.xlu0 %v3452_v18, %s3273_s10 }
  0x52   :  { %818 = vrot.lane.b32.xlu1 %v3478_v22, %s3273_s10 }
  0x55   :  { %820 = vrot.lane.b32.xlu0 %v3490_v24, %s3273_s10 }
  0x56   :  { %822 = vrot.lane.b32.xlu1 %v3513_v28, %s3273_s10 }
  0x59   :  { %824 = vrot.lane.b32.xlu0 %v3522_v29, %s3273_s10 }
  0x5a   :  { %826 = vrot.lane.b32.xlu1 %v3545_v32, %s3273_s10 }
  0x5d   :  { %828 = vrot.lane.b32.xlu0 %v3554_v33, %s3273_s10 }
  0x5e   :  { %830 = vrot.lane.b32.xlu1 %v3577_v36, %s3273_s10 }
  0x61   :  { %832 = vrot.lane.b32.xlu0 %v3586_v37, %s3273_s10 }
  0x62   :  { %834 = vrot.lane.b32.xlu1 %v3609_v40, %s3273_s10 }
  0x65   :  { %836 = vrot.lane.b32.xlu0 %v3618_v41, %s3273_s10 }
  0x66   :  { %838 = vrot.lane.b32.xlu1 %v3641_v44, %s3273_s10 }
  0x69   :  { %840 = vrot.lane.b32.xlu0 %v3650_v45, %s3273_s10 }
  0x6a   :  { %842 = vrot.lane.b32.xlu1 %v3673_v48, %s3273_s10 }
  0x6d   :  { %844 = vrot.lane.b32.xlu0 %v3682_v49, %s3273_s10 }
  0x6e   :  { %846 = vrot.lane.b32.xlu1 %v3705_v52, %s3273_s10 }
  0x71   :  { %848 = vrot.lane.b32.xlu0 %v3714_v53, %s3273_s10 }
  0x72   :  { %850 = vrot.lane.b32.xlu1 %v3737_v56, %s3273_s10 }
  0x75   :  { %852 = vrot.lane.b32.xlu0 %v3746_v57, %s3273_s10 }
  0x76   :  { %854 = vrot.lane.b32.xlu1 %v3769_v60, %s3273_s10 }
  0x77   :  { %v741_v60 = vpop.permute.xlu0 %740 }
  0x78   :  { %v3900_v57 = vpop.permute.xlu1 %744 }
  0x79   :  { %856 = vrot.lane.b32.xlu0 %v3778_v61, %s3273_s10 }
  0x7a   :  { %858 = vrot.lane.b32.xlu1 %v3796_v63, %s3273_s10 }
  0x7b   :  { %v743_v53 = vpop.permute.xlu0 %742 }
  0x7c   :  { %v3902_v63 = vpop.permute.xlu1 %746 }
  0x7d   :  { %860 = vrot.lane.b32.xlu0 %v3805_v0, %s3273_s10 }
  0x7e   :  { %862 = vrot.lane.b32.xlu1 %v3816_v21, %s3273_s10 }
  0x7f   :  { %v3904_v56 = vpop.permute.xlu0 %748 }
  0x80   :  { %v3906_v61 = vpop.permute.xlu1 %750 }
  0x81   :  { %864 = vrot.lane.b32.xlu0 %v3823_v23, %s3273_s10 }
  0x82   :  { %866 = vrot.lane.b32.xlu1 %v3834_v25, %s3273_s10 }
  0x83   :  { %v3908_v21 = vpop.permute.xlu0 %752 }
  0x84   :  { %v3910_v49 = vpop.permute.xlu1 %754 }
  0x85   :  { %1647 = vrot.lane.b32.xlu0 %v3321_v1, %s3274_s0 }
  0x86   :  { %1649 = vrot.lane.b32.xlu1 %v3326_v2, %s3274_s0 }
  0x87   :  { %v3912_v0 = vpop.permute.xlu0 %756 }
  0x88   :  { %v3914_v25 = vpop.permute.xlu1 %758 }
  0x89   :  { %1651 = vrot.lane.b32.xlu0 %v3333_v3, %s3274_s0  ;;  %v3957_v3 = vld [vmem:[%s4964_s2] ss:$0 sm:$0xff] }
  0x8a   :  { %1653 = vrot.lane.b32.xlu1 %v3342_v4, %s3274_s0 }
  0x8b   :  { %v3916_v52 = vpop.permute.xlu0 %760 }
  0x8c   :  { %v3918_v23 = vpop.permute.xlu1 %762 }
  0x8d   :  { %1655 = vrot.lane.b32.xlu0 %v3349_v5, %s3274_s0 }
  0x8e   :  { %1657 = vrot.lane.b32.xlu1 %v3360_v6, %s3274_s0 }
  0x8f   :  { %v3920_v45 = vpop.permute.xlu0 %764 }
  0x90   :  { %v3922_v48 = vpop.permute.xlu1 %766 }
  0x91   :  { %1659 = vrot.lane.b32.xlu0 %v3367_v7, %s3274_s0 }
  0x92   :  { %1661 = vrot.lane.b32.xlu1 %v3393_v11, %s3274_s0 }
  0x93   :  { %v3924_v41 = vpop.permute.xlu0 %768 }
  0x94   :  { %v3930_v44 = vpop.permute.xlu1 %770 }
  0x95   :  { %1663 = vrot.lane.b32.xlu0 %v3400_v12, %s3274_s0 }
  0x96   :  { %1665 = vrot.lane.b32.xlu1 %v3427_v15, %s3274_s0 }
  0x97   :  { %v3932_v37 = vpop.permute.xlu0 %772 }
  0x98   :  { %v3938_v40 = vpop.permute.xlu1 %774 }
  0x99   :  { %1667 = vrot.lane.b32.xlu0 %v3432_v16, %s3274_s0  ;;  %v1903_v16 = vld [vmem:[%s4965_s5] sm:$0xff] }
  0x9a   :  { %1669 = vrot.lane.b32.xlu1 %v3459_v19, %s3274_s0  ;;  %v1904_v19 = vld [vmem:[%s4965_s5 + $0x8] sm:$0xff] }
  0x9b   :  { %v3944_v2 = vpop.permute.xlu0 %776 }
  0x9c   :  { %v3950_v1 = vpop.permute.xlu1 %778 }
  0x9d   :  { %1671 = vrot.lane.b32.xlu0 %v3464_v20, %s3274_s0 }
  0x9e   :  { %1673 = vrot.lane.b32.xlu1 %v3497_v26, %s3274_s0  ;;  %v1906_v26 = vld [vmem:[%s4965_s5 + $0x18] sm:$0xff] }
  0x9f   :  { %v3952_v4 = vpop.permute.xlu0 %780 }
  0xa0   :  { %v3965_v33 = vpop.permute.xlu1 %782 }
  0xa1   :  { %1675 = vrot.lane.b32.xlu0 %v3502_v27, %s3274_s0 }
  0xa2   :  { %1677 = vrot.lane.b32.xlu1 %v3529_v30, %s3274_s0 }
  0xa3   :  { %v3971_v29 = vpop.permute.xlu0 %784 }
  0xa5   :  { %1679 = vrot.lane.b32.xlu0 %v3534_v31, %s3274_s0 }
  0xa6   :  { %1681 = vrot.lane.b32.xlu1 %v3561_v34, %s3274_s0 }
  0xa9   :  { %1683 = vrot.lane.b32.xlu0 %v3566_v35, %s3274_s0 }
  0xaa   :  { %1685 = vrot.lane.b32.xlu1 %v3593_v38, %s3274_s0 }
  0xad   :  { %1687 = vrot.lane.b32.xlu0 %v3598_v39, %s3274_s0 }
  0xae   :  { %1689 = vrot.lane.b32.xlu1 %v3625_v42, %s3274_s0 }
  0xb1   :  { %1691 = vrot.lane.b32.xlu0 %v3630_v43, %s3274_s0 }
  0xb2   :  { %1693 = vrot.lane.b32.xlu1 %v3657_v46, %s3274_s0 }
  0xb5   :  { %1695 = vrot.lane.b32.xlu0 %v3662_v47, %s3274_s0 }
  0xb6   :  { %1697 = vrot.lane.b32.xlu1 %v3689_v50, %s3274_s0 }
  0xb9   :  { %1699 = vrot.lane.b32.xlu0 %v3694_v51, %s3274_s0 }
  0xba   :  { %1701 = vrot.lane.b32.xlu1 %v3721_v54, %s3274_s0 }
  0xbd   :  { %1703 = vrot.lane.b32.xlu0 %v3726_v55, %s3274_s0 }
  0xbe   :  { %1705 = vrot.lane.b32.xlu1 %v3753_v58, %s3274_s0 }
  0xc1   :  { %1707 = vrot.lane.b32.xlu0 %v3758_v59, %s3274_s0 }
  0xc2   :  { %1709 = vrot.lane.b32.xlu1 %v3785_v62, %s3274_s0 }
  0xc5   :  { %1711 = vrot.lane.b32.xlu0 %v3376_v8, %s3274_s0 }
  0xc6   :  { %1713 = vrot.lane.b32.xlu1 %v3381_v9, %s3274_s0 }
  0xc9   :  { %1715 = vrot.lane.b32.xlu0 %v3386_v10, %s3274_s0 }
  0xca   :  { %1717 = vrot.lane.b32.xlu1 %v3411_v13, %s3274_s0 }
  0xcd   :  { %1719 = vrot.lane.b32.xlu0 %v3420_v14, %s3274_s0 }
  0xce   :  { %1721 = vrot.lane.b32.xlu1 %v3443_v17, %s3274_s0 }
  0xd2   :  { %1725 = vrot.lane.b32.xlu1 %v3478_v22, %s3274_s0 }
  0xd7   :  { %v2959_v5 = vpop.f32.mrb[0].mxu0 }
  0xd8   :  { %v363_v6 = vadd.f32 %v2959_v5, %v3957_v3  ;;  %v357_v11 = vpop.f32.mrb[1].mxu0 }
  0xd9   :  { %v358_v7 = vadd.f32 %v3957_v3, %v357_v11 }
  0xda   :  { %v677_v36 = vmax.f32 %v363_v6, 0.0 }
  0xdb   :  { %v676_v15 = vmax.f32 %v358_v7, 0.0  ;;  %v2962_v32 = vpop.f32.mrb[2].mxu0  ;;  %v3261_v7 = vpack.c.bf16 %v1904_v19, %v1903_v16  ;;  %v4000_v19 = vpop.f32.mrb[0].mxu1 }
  0xdc   :  { %v373_v12 = vadd.f32 %v2962_v32, %v3957_v3  ;;  %v367_v24 = vpop.f32.mrb[3].mxu0  ;;  %v933_v32 = vadd.f32 %v743_v53, %v677_v36  ;;  %v3996_v53 = vpop.permute.xlu0 %788 }
  0xdd   :  { %v932_v5 = vadd.f32 %v741_v60, %v676_v15  ;;  %v368_v11 = vadd.f32 %v3957_v3, %v367_v24  ;;  %v1905_v24 = vld [vmem:[%s4965_s5 + $0x10] sm:$0xff]  ;;  %v3992_v15 = vpop.permute.xlu1 %786  ;;  %3262 = vmatprep.subr.bf16.mxu0 %v3261_v7 }
  0xde   :  { %v679_v6 = vmax.f32 %v373_v12, 0.0  ;;  %v3265_v28 = vpack.c.bf16 %v1906_v26, %v1905_v24  ;;  %v4007_v24 = vpop.f32.mrb[1].mxu1  ;;  %3264 = vmatpush3.bf16.msra.mxu0 %v3261_v7 }
  0xdf   :  { %v678_v20 = vmax.f32 %v368_v11, 0.0  ;;  %v2965_v60 = vpop.f32.mrb[4].mxu0  ;;  %3057 = vmatprep.mubr.msk.f32.mxu1 %vm1005_vm1, %v932_v5 }
  0xe0   :  { %v383_v18 = vadd.f32 %v2965_v60, %v3957_v3  ;;  %v377_v36 = vpop.f32.mrb[5].mxu0  ;;  %3058 = vmatmul.mubr.msk.f32.vlgmr.msra.gmra.mrb[32].mxu1 %vm1005_vm1, %v933_v32  ;;  %v935_v5 = vadd.f32 %v3902_v63, %v679_v6  ;;  %3266 = vmatprep.subr.bf16.mxu0 %v3265_v28  ;;  %v4023_v7 = vpop.permute.xlu0 %792 }
  0xe1   :  { %v934_v12 = vadd.f32 %v3900_v57, %v678_v20  ;;  %v378_v16 = vadd.f32 %v3957_v3, %v377_v36  ;;  %v4014_v60 = vpop.permute.xlu1 %790 }
  0xe2   :  { %v681_v11 = vmax.f32 %v383_v18, 0.0  ;;  %v4016_v18 = vpop.f32.mrb[2].mxu1  ;;  %3268 = vmatpush3.bf16.msra.mxu0 %v3265_v28 }
  0xe3   :  { %v680_v32 = vmax.f32 %v378_v16, 0.0  ;;  %v2968_v26 = vpop.f32.mrb[6].mxu0  ;;  %3060 = vmatprep.mubr.msk.f32.mxu1 %vm1005_vm1, %v934_v12  ;;  %v4025_v36 = vpop.f32.mrb[3].mxu1 }
  0xe4   :  { %v393_v57 = vadd.f32 %v2968_v26, %v3957_v3  ;;  %v387_v20 = vpop.f32.mrb[7].mxu0  ;;  %3061 = vmatmul.mubr.msk.f32.gmra.mrb[34].mxu1 %vm1005_vm1, %v935_v5  ;;  %v937_v63 = vadd.f32 %v3906_v61, %v681_v11  ;;  %v4032_v61 = vpop.f32.mrb[4].mxu1 }
  0xe5   :  { %v936_v30 = vadd.f32 %v3904_v56, %v680_v32  ;;  %v388_v27 = vadd.f32 %v3957_v3, %v387_v20  ;;  %v4039_v32 = vpop.f32.mrb[5].mxu1  ;;  %v4046_v38 = vpop.permute.xlu0 %796 }
  0xe6   :  { %v683_v6 = vmax.f32 %v393_v57, 0.0 }
  0xe7   :  { %v682_v56 = vmax.f32 %v388_v27, 0.0  ;;  %v2971_v12 = vpop.f32.mrb[8].mxu0  ;;  %3063 = vmatprep.mubr.msk.f32.mxu1 %vm1005_vm1, %v936_v30  ;;  %v4050_v27 = vpop.f32.mrb[6].mxu1 }
  0xe8   :  { %v403_v16 = vadd.f32 %v2971_v12, %v3957_v3  ;;  %v397_v5 = vpop.f32.mrb[9].mxu0  ;;  %3064 = vmatmul.mubr.msk.f32.gmra.mrb[36].mxu1 %vm1005_vm1, %v937_v63  ;;  %v939_v28 = vadd.f32 %v3910_v49, %v683_v6 }
  0xe9   :  { %v938_v34 = vadd.f32 %v3908_v21, %v682_v56  ;;  %v398_v31 = vadd.f32 %v3957_v3, %v397_v5  ;;  %v4042_v21 = vpop.permute.xlu1 %794  ;;  %v4057_v56 = vpop.f32.mrb[7].mxu1 }
  0xea   :  { %v685_v11 = vmax.f32 %v403_v16, 0.0  ;;  %v4066_v39 = vpop.f32.mrb[8].mxu1 }
  0xeb   :  { %v684_v26 = vmax.f32 %v398_v31, 0.0  ;;  %v2974_v57 = vpop.f32.mrb[10].mxu0  ;;  %3066 = vmatprep.mubr.msk.f32.mxu1 %vm1005_vm1, %v938_v34 }
  0xec   :  { %v413_v20 = vadd.f32 %v2974_v57, %v3957_v3  ;;  %v407_v30 = vpop.f32.mrb[11].mxu0  ;;  %3067 = vmatmul.mubr.msk.f32.gmra.mrb[38].mxu1 %vm1005_vm1, %v939_v28  ;;  %v941_v63 = vadd.f32 %v3914_v25, %v685_v11  ;;  %v4073_v11 = vpop.permute.xlu0 %800 }
  0xed   :  { %v940_v35 = vadd.f32 %v3912_v0, %v684_v26  ;;  %v408_v49 = vadd.f32 %v3957_v3, %v407_v30  ;;  %v4064_v31 = vpop.permute.xlu1 %798  ;;  %v4075_v26 = vpop.f32.mrb[9].mxu1 }
  0xee   :  { %v687_v6 = vmax.f32 %v413_v20, 0.0 }
  0xef   :  { %v686_v12 = vmax.f32 %v408_v49, 0.0  ;;  %v2977_v16 = vpop.f32.mrb[12].mxu0  ;;  %3069 = vmatprep.mubr.msk.f32.mxu1 %vm1005_vm1, %v940_v35  ;;  %v4082_v35 = vpop.f32.mrb[10].mxu1 }
  0xf0   :  { %v423_v0 = vadd.f32 %v2977_v16, %v3957_v3  ;;  %v417_v5 = vpop.f32.mrb[13].mxu0  ;;  %3070 = vmatmul.mubr.msk.f32.gmra.mrb[40].mxu1 %vm1005_vm1, %v941_v63  ;;  %v943_v25 = vadd.f32 %v3918_v23, %v687_v6  ;;  %v4089_v63 = vpop.f32.mrb[11].mxu1 }
  0xf1   :  { %v942_v34 = vadd.f32 %v3916_v52, %v686_v12  ;;  %v418_v42 = vadd.f32 %v3957_v3, %v417_v5  ;;  %v4096_v50 = vpop.permute.xlu0 %804 }
  0xf2   :  { %v689_v28 = vmax.f32 %v423_v0, 0.0  ;;  %v4100_v5 = vpop.f32.mrb[12].mxu1 }
  0xf3   :  { %v688_v52 = vmax.f32 %v418_v42, 0.0  ;;  %v2980_v57 = vpop.f32.mrb[14].mxu0  ;;  %3072 = vmatprep.mubr.msk.f32.mxu1 %vm1005_vm1, %v942_v34 }
  0xf4   :  { %v433_v20 = vadd.f32 %v2980_v57, %v3957_v3  ;;  %v427_v30 = vpop.f32.mrb[15].mxu0  ;;  %3073 = vmatmul.mubr.msk.f32.gmra.mrb[42].mxu1 %vm1005_vm1, %v943_v25  ;;  %v945_v23 = vadd.f32 %v3922_v48, %v689_v28  ;;  %v4107_v25 = vpop.f32.mrb[13].mxu1 }
  0xf5   :  { %v944_v46 = vadd.f32 %v3920_v45, %v688_v52  ;;  %v428_v43 = vadd.f32 %v3957_v3, %v427_v30  ;;  %v4092_v45 = vpop.permute.xlu1 %802 }
  0xf6   :  { %v691_v49 = vmax.f32 %v433_v20, 0.0  ;;  %v4116_v51 = vpop.f32.mrb[14].mxu1 }
  0xf7   :  { %v690_v6 = vmax.f32 %v428_v43, 0.0  ;;  %v2983_v12 = vpop.f32.mrb[16].mxu0  ;;  %3075 = vmatprep.mubr.msk.f32.mxu1 %vm1005_vm1, %v944_v46  ;;  %v4123_v43 = vpop.permute.xlu0 %808 }
  0xf8   :  { %v443_v16 = vadd.f32 %v2983_v12, %v3957_v3  ;;  %v437_v0 = vpop.f32.mrb[17].mxu0  ;;  %3076 = vmatmul.mubr.msk.f32.gmra.mrb[44].mxu1 %vm1005_vm1, %v945_v23  ;;  %v947_v34 = vadd.f32 %v3930_v44, %v691_v49  ;;  %v4125_v23 = vpop.f32.mrb[15].mxu1 }
  0xf9   :  { %v946_v47 = vadd.f32 %v3924_v41, %v690_v6  ;;  %v438_v48 = vadd.f32 %v3957_v3, %v437_v0  ;;  %v4114_v30 = vpop.permute.xlu1 %806 }
  0xfa   :  { %v693_v42 = vmax.f32 %v443_v16, 0.0  ;;  %v4132_v16 = vpop.f32.mrb[16].mxu1 }
  0xfb   :  { %v692_v28 = vmax.f32 %v438_v48, 0.0  ;;  %v2986_v52 = vpop.f32.mrb[18].mxu0  ;;  %3078 = vmatprep.mubr.msk.f32.mxu1 %vm1005_vm1, %v946_v47  ;;  %v4139_v47 = vpop.f32.mrb[17].mxu1 }
  0xfc   :  { %v453_v41 = vadd.f32 %v2986_v52, %v3957_v3  ;;  %v447_v57 = vpop.f32.mrb[19].mxu0  ;;  %3079 = vmatmul.mubr.msk.f32.gmra.mrb[46].mxu1 %vm1005_vm1, %v947_v34  ;;  %v949_v44 = vadd.f32 %v3938_v40, %v693_v42  ;;  %v4146_v62 = vpop.permute.xlu0 %812 }
  0xfd   :  { %v948_v20 = vadd.f32 %v3932_v37, %v692_v28  ;;  %v448_v54 = vadd.f32 %v3957_v3, %v447_v57 }
  0xfe   :  { %v695_v46 = vmax.f32 %v453_v41, 0.0  ;;  %v4150_v52 = vpop.f32.mrb[18].mxu1 }
  0xff   :  { %v694_v37 = vmax.f32 %v448_v54, 0.0  ;;  %v2989_v49 = vpop.f32.mrb[20].mxu0  ;;  %3081 = vmatprep.mubr.msk.f32.mxu1 %vm1005_vm1, %v948_v20  ;;  %v4157_v20 = vpop.f32.mrb[19].mxu1 }
 0x100   :  { %v463_v6 = vadd.f32 %v2989_v49, %v3957_v3  ;;  %v457_v12 = vpop.f32.mrb[21].mxu0  ;;  %3082 = vmatmul.mubr.msk.f32.gmra.mrb[48].mxu1 %vm1005_vm1, %v949_v44  ;;  %v951_v40 = vadd.f32 %v3950_v1, %v695_v46 }
 0x101   :  { %v950_v58 = vadd.f32 %v3944_v2, %v694_v37  ;;  %v458_v55 = vadd.f32 %v3957_v3, %v457_v12  ;;  %v4142_v2 = vpop.permute.xlu1 %810  ;;  %v4173_v12 = vpop.permute.xlu0 %816 }
 0x102   :  { %v697_v0 = vmax.f32 %v463_v6, 0.0  ;;  %v4166_v8 = vpop.f32.mrb[20].mxu1 }
 0x103   :  { %v696_v48 = vmax.f32 %v458_v55, 0.0  ;;  %v2992_v34 = vpop.f32.mrb[22].mxu0  ;;  %3084 = vmatprep.mubr.msk.f32.mxu1 %vm1005_vm1, %v950_v58  ;;  %v4175_v58 = vpop.f32.mrb[21].mxu1 }
 0x104   :  { %v473_v42 = vadd.f32 %v2992_v34, %v3957_v3  ;;  %v467_v28 = vpop.f32.mrb[23].mxu0  ;;  %3085 = vmatmul.mubr.msk.f32.gmra.mrb[50].mxu1 %vm1005_vm1, %v951_v40  ;;  %v953_v41 = vadd.f32 %v3965_v33, %v697_v0 }
 0x105   :  { %v952_v59 = vadd.f32 %v3952_v4, %v696_v48  ;;  %v468_v1 = vadd.f32 %v3957_v3, %v467_v28  ;;  %v4164_v49 = vpop.permute.xlu1 %814  ;;  %v4196_v17 = vpop.permute.xlu0 %820 }
 0x106   :  { %v699_v57 = vmax.f32 %v473_v42, 0.0  ;;  %v4182_v48 = vpop.f32.mrb[22].mxu1 }
 0x107   :  { %v698_v54 = vmax.f32 %v468_v1, 0.0  ;;  %v2995_v44 = vpop.f32.mrb[24].mxu0  ;;  %3087 = vmatprep.mubr.msk.f32.mxu1 %vm1005_vm1, %v952_v59  ;;  %v4189_v42 = vpop.f32.mrb[23].mxu1 }
 0x108   :  { %v483_v4 = vadd.f32 %v2995_v44, %v3957_v3  ;;  %v477_v46 = vpop.f32.mrb[25].mxu0  ;;  %3088 = vmatmul.mubr.msk.f32.gmra.mrb[52].mxu1 %vm1005_vm1, %v953_v41  ;;  %v955_v33 = vadd.f32 %v3992_v15, %v699_v57  ;;  %v518_v57 = vadd.f32 %v3957_v3, %v4007_v24  ;;  %v5019_v44 = vld [vmem:[#allocation2_spill] sm:$0xff] }
 0x109   :  { %v954_v37 = vadd.f32 %v3971_v29, %v698_v54  ;;  %v478_v9 = vadd.f32 %v3957_v3, %v477_v46  ;;  %1723 = vrot.lane.b32.xlu0 %v5019_v44, %s3274_s0 }
 0x10a   :  { %v701_v6 = vmax.f32 %v483_v4, 0.0  ;;  %v4202_v54 = vpop.f32.mrb[24].mxu1 }
 0x10b   :  { %v700_v29 = vmax.f32 %v478_v9, 0.0  ;;  %v2998_v55 = vpop.f32.mrb[26].mxu0  ;;  %3090 = vmatprep.mubr.msk.f32.mxu1 %vm1005_vm1, %v954_v37  ;;  %v4209_v37 = vpop.f32.mrb[25].mxu1 }
 0x10c   :  { %v493_v40 = vadd.f32 %v2998_v55, %v3957_v3  ;;  %v487_v0 = vpop.f32.mrb[27].mxu0  ;;  %3091 = vmatmul.mubr.msk.f32.gmra.mrb[54].mxu1 %vm1005_vm1, %v955_v33  ;;  %v957_v15 = vadd.f32 %v4014_v60, %v701_v6 }
 0x10d   :  { %v956_v13 = vadd.f32 %v3996_v53, %v700_v29  ;;  %v488_v10 = vadd.f32 %v3957_v3, %v487_v0  ;;  %v4192_v53 = vpop.permute.xlu1 %818  ;;  %v708_v29 = vmax.f32 %v518_v57, 0.0  ;;  %v5020_v0 = vld [vmem:[#allocation4_spill] sm:$0xff] }
 0x10e   :  { %v703_v34 = vmax.f32 %v493_v40, 0.0  ;;  %v4220_v40 = vpop.f32.mrb[26].mxu1  ;;  %1729 = vrot.lane.b32.xlu1 %v5020_v0, %s3274_s0 }
 0x10f   :  { %v702_v28 = vmax.f32 %v488_v10, 0.0  ;;  %v3001_v59 = vpop.f32.mrb[28].mxu0  ;;  %3093 = vmatprep.mubr.msk.f32.mxu1 %vm1005_vm1, %v956_v13  ;;  %v5021_v13 = vld [vmem:[#allocation3_spill] sm:$0xff] }
 0x110   :  { %v503_v1 = vadd.f32 %v3001_v59, %v3957_v3  ;;  %v497_v41 = vpop.f32.mrb[29].mxu0  ;;  %3094 = vmatmul.mubr.msk.f32.gmra.mrb[56].mxu1 %vm1005_vm1, %v957_v15  ;;  %v959_v4 = vadd.f32 %v4042_v21, %v703_v34  ;;  %v528_v21 = vadd.f32 %v3957_v3, %v4025_v36  ;;  %1727 = vrot.lane.b32.xlu0 %v5021_v13, %s3274_s0  ;;  %v4229_v34 = vpop.permute.xlu0 %824 }
 0x111   :  { %v958_v14 = vadd.f32 %v4023_v7, %v702_v28  ;;  %v498_v60 = vadd.f32 %v3957_v3, %v497_v41  ;;  %v4218_v55 = vpop.permute.xlu1 %822  ;;  %v4231_v28 = vpop.f32.mrb[27].mxu1  ;;  %v964_v41 = vadd.f32 %v4096_v50, %v708_v29  ;;  %v5025_v29 = vld [vmem:[#allocation7_spill] sm:$0xff] }
 0x112   :  { %v705_v46 = vmax.f32 %v503_v1, 0.0  ;;  %v710_v1 = vmax.f32 %v528_v21, 0.0  ;;  %v558_v21 = vadd.f32 %v3957_v3, %v4075_v26 }
 0x113   :  { %v704_v9 = vmax.f32 %v498_v60, 0.0  ;;  %v3004_v7 = vpop.f32.mrb[30].mxu0  ;;  %3096 = vmatprep.mubr.msk.f32.mxu1 %vm1005_vm1, %v958_v14  ;;  %v4239_v14 = vpop.f32.mrb[28].mxu1  ;;  %v5023_v60 = vld [vmem:[#allocation5_spill] sm:$0xff] }
 0x114   :  { %v513_v33 = vadd.f32 %v3004_v7, %v3957_v3  ;;  %v507_v24 = vpop.f32.mrb[31].mxu0  ;;  %3097 = vmatmul.mubr.msk.f32.gmra.mrb[58].mxu1 %vm1005_vm1, %v959_v4  ;;  %v961_v10 = vadd.f32 %v4064_v31, %v705_v46  ;;  %v538_v31 = vadd.f32 %v3957_v3, %v4039_v32  ;;  %1731 = vrot.lane.b32.xlu0 %v5023_v60, %s3274_s0  ;;  %v4248_v4 = vpop.f32.mrb[29].mxu1 }
 0x115   :  { %v960_v6 = vadd.f32 %v4046_v38, %v704_v9  ;;  %v508_v22 = vadd.f32 %v3957_v3, %v507_v24  ;;  %v523_v38 = vadd.f32 %v4000_v19, %v3957_v3  ;;  %v5022_v19 = vld [vmem:[#allocation6_spill] sm:$0xff]  ;;  %v4251_v50 = vpop.permute.xlu1 %826  ;;  %v829_v32 = vpop.permute.xlu0 %828  ;;  %v966_v9 = vadd.f32 %v4123_v43, %v710_v1 }
 0x116   :  { %v707_v15 = vmax.f32 %v513_v33, 0.0  ;;  %1733 = vrot.lane.b32.xlu1 %v5022_v19, %s3274_s0  ;;  %v712_v46 = vmax.f32 %v538_v31, 0.0  ;;  %v4258_v7 = vpop.f32.mrb[30].mxu1  ;;  %v563_v1 = vadd.f32 %v4066_v39, %v3957_v3  ;;  %v578_v60 = vadd.f32 %v3957_v3, %v4107_v25 }
 0x117   :  { %v706_v36 = vmax.f32 %v508_v22, 0.0  ;;  %3099 = vmatprep.mubr.msk.f32.mxu1 %vm1005_vm1, %v960_v6  ;;  %v709_v57 = vmax.f32 %v523_v38, 0.0  ;;  %v543_v6 = vadd.f32 %v4032_v61, %v3957_v3  ;;  %v4265_v22 = vpop.f32.mrb[31].mxu1  ;;  %v5027_v38 = vld [vmem:[#allocation9_spill] sm:$0xff]  ;;  %v588_v25 = vadd.f32 %v3957_v3, %v4125_v23 }
 0x118   :  { %3100 = vmatmul.mubr.msk.f32.gmra.mrb[60].mxu1 %vm1005_vm1, %v961_v10  ;;  %v963_v44 = vadd.f32 %v4092_v45, %v707_v15  ;;  %v548_v45 = vadd.f32 %v3957_v3, %v4057_v56  ;;  %1735 = vrot.lane.b32.xlu0 %v5025_v29, %s3274_s0  ;;  %v968_v43 = vadd.f32 %v4146_v62, %v712_v46  ;;  %v716_v62 = vmax.f32 %v558_v21, 0.0  ;;  %v5034_v29 = vld [vmem:[#allocation18_spill] sm:$0xff] }
 0x119   :  { %v962_v59 = vadd.f32 %v4073_v11, %v706_v36  ;;  %v533_v11 = vadd.f32 %v4016_v18, %v3957_v3  ;;  %v5024_v18 = vld [vmem:[#allocation8_spill] sm:$0xff]  ;;  %v965_v24 = vadd.f32 %v4114_v30, %v709_v57  ;;  %v831_v0 = vpop.permute.xlu1 %830  ;;  %v5026_v30 = vld [vmem:[#allocation10_spill] sm:$0xff]  ;;  %v713_v61 = vmax.f32 %v543_v6, 0.0  ;;  %v833_v15 = vpop.permute.xlu0 %832 }
 0x11a   :  { %1737 = vrot.lane.b32.xlu1 %v5024_v18, %s3274_s0  ;;  %v714_v56 = vmax.f32 %v548_v45, 0.0  ;;  %v553_v10 = vadd.f32 %v4050_v27, %v3957_v3  ;;  %v568_v36 = vadd.f32 %v3957_v3, %v4089_v63  ;;  %v972_v63 = vadd.f32 %v4196_v17, %v716_v62  ;;  %v5032_v45 = vld [vmem:[#allocation16_spill] sm:$0xff] }
 0x11b   :  { %3102 = vmatprep.mubr.msk.f32.mxu1 %vm1005_vm1, %v962_v59  ;;  %v711_v33 = vmax.f32 %v533_v11, 0.0  ;;  %v5028_v59 = vld [vmem:[#allocation12_spill] sm:$0xff]  ;;  %v969_v27 = vadd.f32 %v4164_v49, %v713_v61  ;;  %v5030_v49 = vld [vmem:[#allocation14_spill] sm:$0xff]  ;;  %v717_v57 = vmax.f32 %v563_v1, 0.0  ;;  %v5031_v11 = vld [vmem:[#allocation13_spill] sm:$0xff]  ;;  %v720_v17 = vmax.f32 %v578_v60, 0.0 }
 0x11c   :  { %3103 = vmatmul.mubr.msk.f32.gmra.mrb[62].mxu1 %vm1005_vm1, %v963_v44  ;;  %1739 = vrot.lane.b32.xlu0 %v5027_v38, %s3274_s0  ;;  %v970_v26 = vadd.f32 %v4173_v12, %v714_v56  ;;  %v718_v12 = vmax.f32 %v568_v36, 0.0  ;;  %v573_v44 = vadd.f32 %v4082_v35, %v3957_v3  ;;  %v583_v18 = vadd.f32 %v4100_v5, %v3957_v3  ;;  %v5037_v38 = vld [vmem:[#allocation19_spill] sm:$0xff]  ;;  %v5038_v36 = vld [vmem:[#allocation22_spill] sm:$0xff] }
 0x11d   :  { %3105 = vmatprep.mubr.msk.f32.mxu1 %vm1005_vm1, %v964_v41  ;;  %v967_v13 = vadd.f32 %v4142_v2, %v711_v33  ;;  %v715_v2 = vmax.f32 %v553_v10, 0.0  ;;  %v5029_v41 = vld [vmem:[#allocation11_spill] sm:$0xff]  ;;  %v835_v31 = vpop.permute.xlu1 %834  ;;  %v837_v19 = vpop.permute.xlu0 %836  ;;  %v973_v35 = vadd.f32 %v4218_v55, %v717_v57  ;;  %v976_v23 = vadd.f32 %v829_v32, %v720_v17 }
 0x11e   :  { %1741 = vrot.lane.b32.xlu1 %v5026_v30, %s3274_s0  ;;  %v974_v46 = vadd.f32 %v4229_v34, %v718_v12  ;;  %v722_v34 = vmax.f32 %v588_v25, 0.0  ;;  %v598_v6 = vadd.f32 %v3957_v3, %v4139_v47  ;;  %v721_v55 = vmax.f32 %v583_v18, 0.0 }
 0x11f   :  { %v971_v39 = vadd.f32 %v4192_v53, %v715_v2  ;;  %v719_v53 = vmax.f32 %v573_v44, 0.0  ;;  %v593_v5 = vadd.f32 %v4116_v51, %v3957_v3  ;;  %v608_v61 = vadd.f32 %v3957_v3, %v4157_v20  ;;  %v5042_v44 = vld [vmem:[#allocation26_spill] sm:$0xff] }
 0x120   :  { %3106 = vmatmul.mubr.msk.f32.gmra.mrb[64].mxu1 %vm1005_vm1, %v965_v24  ;;  %1743 = vrot.lane.b32.xlu0 %v5029_v41, %s3274_s0  ;;  %v5033_v24 = vld [vmem:[#allocation15_spill] sm:$0xff]  ;;  %v724_v32 = vmax.f32 %v598_v6, 0.0  ;;  %v978_v47 = vadd.f32 %v833_v15, %v722_v34  ;;  %v977_v10 = vadd.f32 %v831_v0, %v721_v55  ;;  %v603_v51 = vadd.f32 %v4132_v16, %v3957_v3 }
 0x121   :  { %3108 = vmatprep.mubr.msk.f32.mxu1 %vm1005_vm1, %v966_v9  ;;  %v839_v9 = vpop.permute.xlu1 %838  ;;  %v841_v33 = vpop.permute.xlu0 %840  ;;  %v975_v56 = vadd.f32 %v4251_v50, %v719_v53  ;;  %v723_v50 = vmax.f32 %v593_v5, 0.0  ;;  %v726_v62 = vmax.f32 %v608_v61, 0.0  ;;  %v618_v20 = vadd.f32 %v3957_v3, %v4175_v58 }
 0x122   :  { %1745 = vrot.lane.b32.xlu1 %v5028_v59, %s3274_s0  ;;  %v980_v15 = vadd.f32 %v837_v19, %v724_v32  ;;  %v725_v0 = vmax.f32 %v603_v51, 0.0  ;;  %v613_v16 = vadd.f32 %v4150_v52, %v3957_v3  ;;  %v628_v58 = vadd.f32 %v3957_v3, %v4189_v42  ;;  %v5040_v19 = vld [vmem:[#allocation24_spill] sm:$0xff] }
 0x123   :  { %v979_v59 = vadd.f32 %v835_v31, %v723_v50  ;;  %v728_v1 = vmax.f32 %v618_v20, 0.0  ;;  %v982_v41 = vadd.f32 %v841_v33, %v726_v62  ;;  %v623_v52 = vadd.f32 %v4166_v8, %v3957_v3 }
 0x124   :  { %3109 = vmatmul.mubr.msk.f32.gmra.mrb[66].mxu1 %vm1005_vm1, %v967_v13  ;;  %1747 = vrot.lane.b32.xlu0 %v5031_v11, %s3274_s0  ;;  %v5036_v13 = vld [vmem:[#allocation20_spill] sm:$0xff]  ;;  %v727_v31 = vmax.f32 %v613_v16, 0.0  ;;  %v981_v12 = vadd.f32 %v839_v9, %v725_v0  ;;  %v730_v57 = vmax.f32 %v628_v58, 0.0  ;;  %v638_v42 = vadd.f32 %v3957_v3, %v4209_v37 }
 0x125   :  { %3111 = vmatprep.mubr.msk.f32.mxu1 %vm1005_vm1, %v968_v43  ;;  %v5035_v43 = vld [vmem:[#allocation17_spill] sm:$0xff]  ;;  %v843_v21 = vpop.permute.xlu1 %842  ;;  %v845_v30 = vpop.permute.xlu0 %844  ;;  %v729_v11 = vmax.f32 %v623_v52, 0.0  ;;  %v633_v8 = vadd.f32 %v4182_v48, %v3957_v3  ;;  %v648_v37 = vadd.f32 %v3957_v3, %v4231_v28  ;;  %v643_v18 = vadd.f32 %v4202_v54, %v3957_v3 }
 0x126   :  { %1749 = vrot.lane.b32.xlu1 %v5030_v49, %s3274_s0  ;;  %v983_v17 = vadd.f32 %v843_v21, %v727_v31  ;;  %v732_v25 = vmax.f32 %v638_v42, 0.0  ;;  %v658_v34 = vadd.f32 %v3957_v3, %v4248_v4  ;;  %v653_v28 = vadd.f32 %v4220_v40, %v3957_v3 }
 0x127   :  { %v731_v53 = vmax.f32 %v633_v8, 0.0  ;;  %v734_v48 = vmax.f32 %v648_v37, 0.0  ;;  %v668_v5 = vadd.f32 %v3957_v3, %v4265_v22  ;;  %v663_v4 = vadd.f32 %v4239_v14, %v3957_v3 }
 0x128   :  { %3112 = vmatmul.mubr.msk.f32.gmra.mrb[68].mxu1 %vm1005_vm1, %v969_v27  ;;  %1751 = vrot.lane.b32.xlu0 %v5033_v24, %s3274_s0  ;;  %v5039_v27 = vld [vmem:[#allocation21_spill] sm:$0xff]  ;;  %v736_v54 = vmax.f32 %v658_v34, 0.0 }
 0x129   :  { %3114 = vmatprep.mubr.msk.f32.mxu1 %vm1005_vm1, %v970_v26  ;;  %v847_v26 = vpop.permute.xlu1 %846  ;;  %v849_v2 = vpop.permute.xlu0 %848  ;;  %v738_v40 = vmax.f32 %v668_v5, 0.0 }
 0x12a   :  { %1753 = vrot.lane.b32.xlu1 %v5032_v45, %s3274_s0  ;;  %v986_v9 = vadd.f32 %v849_v2, %v730_v57 }
 0x12c   :  { %3115 = vmatmul.mubr.msk.f32.gmra.mrb[70].mxu1 %vm1005_vm1, %v971_v39  ;;  %1755 = vrot.lane.b32.xlu0 %v5035_v43, %s3274_s0  ;;  %v984_v39 = vadd.f32 %v845_v30, %v728_v1  ;;  %v735_v43 = vmax.f32 %v653_v28, 0.0 }
 0x12d   :  { %3117 = vmatprep.mubr.msk.f32.mxu1 %vm1005_vm1, %v972_v63  ;;  %v5041_v63 = vld [vmem:[#allocation23_spill] sm:$0xff]  ;;  %v851_v60 = vpop.permute.xlu1 %850  ;;  %v853_v49 = vpop.permute.xlu0 %852 }
 0x12e   :  { %1757 = vrot.lane.b32.xlu1 %v5034_v29, %s3274_s0  ;;  %v988_v24 = vadd.f32 %v853_v49, %v732_v25  ;;  %v987_v6 = vadd.f32 %v851_v60, %v731_v53  ;;  %v4424_v60 = vld [vmem:[%s4966_s4] ss:$0 sm:$0xff] }
 0x130   :  { %3118 = vmatmul.mubr.msk.f32.gmra.mrb[72].mxu1 %vm1005_vm1, %v973_v35  ;;  %1759 = vrot.lane.b32.xlu0 %v5037_v38, %s3274_s0  ;;  %v985_v35 = vadd.f32 %v847_v26, %v729_v11 }
 0x131   :  { %3120 = vmatprep.mubr.msk.f32.mxu1 %vm1005_vm1, %v974_v46  ;;  %v5043_v46 = vld [vmem:[#allocation25_spill] sm:$0xff]  ;;  %v855_v45 = vpop.permute.xlu1 %854  ;;  %v857_v33 = vpop.permute.xlu0 %856 }
 0x132   :  { %1761 = vrot.lane.b32.xlu1 %v5036_v13, %s3274_s0  ;;  %v673_v13 = vadd.f32 %v4258_v7, %v3957_v3 }
 0x134   :  { %3121 = vmatmul.mubr.msk.f32.gmra.mrb[74].mxu1 %vm1005_vm1, %v975_v56  ;;  %1763 = vrot.lane.b32.xlu0 %v5039_v27, %s3274_s0  ;;  %v990_v56 = vadd.f32 %v857_v33, %v734_v48 }
 0x135   :  { %3123 = vmatprep.mubr.msk.f32.mxu1 %vm1005_vm1, %v976_v23  ;;  %v733_v23 = vmax.f32 %v643_v18, 0.0  ;;  %v859_v29 = vpop.permute.xlu1 %858  ;;  %v861_v55 = vpop.permute.xlu0 %860 }
 0x136   :  { %1765 = vrot.lane.b32.xlu1 %v5038_v36, %s3274_s0  ;;  %v992_v32 = vadd.f32 %v861_v55, %v736_v54  ;;  %v991_v61 = vadd.f32 %v859_v29, %v735_v43 }
 0x137   :  { %v989_v21 = vadd.f32 %v855_v45, %v733_v23 }
 0x138   :  { %3124 = vmatmul.mubr.msk.f32.gmra.mrb[76].mxu1 %vm1005_vm1, %v977_v10  ;;  %1767 = vrot.lane.b32.xlu0 %v5041_v63, %s3274_s0  ;;  %v739_v10 = vmax.f32 %v673_v13, 0.0 }
 0x139   :  { %3126 = vmatprep.mubr.msk.f32.mxu1 %vm1005_vm1, %v978_v47  ;;  %v863_v30 = vpop.permute.xlu1 %862  ;;  %v737_v47 = vmax.f32 %v663_v4, 0.0  ;;  %v865_v50 = vpop.permute.xlu0 %864 }
 0x13a   :  { %1769 = vrot.lane.b32.xlu1 %v5040_v19, %s3274_s0  ;;  %v994_v22 = vadd.f32 %v865_v50, %v738_v40 }
 0x13b   :  { %v993_v14 = vadd.f32 %v863_v30, %v737_v47 }
 0x13c   :  { %3127 = vmatmul.mubr.msk.f32.gmra.mrb[78].mxu1 %vm1005_vm1, %v979_v59  ;;  %1771 = vrot.lane.b32.xlu0 %v5043_v46, %s3274_s0 }
 0x13d   :  { %3129 = vmatprep.mubr.msk.f32.mxu1 %vm1005_vm1, %v980_v15  ;;  %v867_v51 = vpop.permute.xlu1 %866  ;;  %v1648_v62 = vpop.permute.xlu0 %1647 }
 0x13e   :  { %1773 = vrot.lane.b32.xlu1 %v5042_v44, %s3274_s0  ;;  %v995_v38 = vadd.f32 %v867_v51, %v739_v10 }
 0x140   :  { %3130 = vmatmul.mubr.msk.f32.gmra.mrb[80].mxu1 %vm1005_vm1, %v981_v12 }
 0x141   :  { %3132 = vmatprep.mubr.msk.f32.mxu1 %vm1005_vm1, %v982_v41  ;;  %v1650_v15 = vpop.permute.xlu1 %1649  ;;  %v1652_v20 = vpop.permute.xlu0 %1651 }
 0x144   :  { %3133 = vmatmul.mubr.msk.f32.gmra.mrb[82].mxu1 %vm1005_vm1, %v983_v17 }
 0x145   :  { %3135 = vmatprep.mubr.msk.f32.mxu1 %vm1005_vm1, %v984_v39  ;;  %v1654_v3 = vpop.permute.xlu1 %1653  ;;  %v1656_v7 = vpop.permute.xlu0 %1655 }
 0x148   :  { %3136 = vmatmul.mubr.msk.f32.gmra.mrb[84].mxu1 %vm1005_vm1, %v985_v35 }
 0x149   :  { %3138 = vmatprep.mubr.msk.f32.mxu1 %vm1005_vm1, %v986_v9  ;;  %v1658_v26 = vpop.permute.xlu1 %1657  ;;  %v1660_v36 = vpop.permute.xlu0 %1659 }
 0x14c   :  { %3139 = vmatmul.mubr.msk.f32.gmra.mrb[86].mxu1 %vm1005_vm1, %v987_v6 }
 0x14d   :  { %3141 = vmatprep.mubr.msk.f32.mxu1 %vm1005_vm1, %v988_v24  ;;  %v4395_v0 = vpop.permute.xlu1 %1661  ;;  %v4397_v59 = vpop.permute.xlu0 %1663 }
 0x150   :  { %3142 = vmatmul.mubr.msk.f32.gmra.mrb[88].mxu1 %vm1005_vm1, %v989_v21 }
 0x151   :  { %3144 = vmatprep.mubr.msk.f32.mxu1 %vm1005_vm1, %v990_v56  ;;  %v4399_v16 = vpop.permute.xlu1 %1665  ;;  %v4401_v2 = vpop.permute.xlu0 %1667 }
 0x154   :  { %3145 = vmatmul.mubr.msk.f32.gmra.mrb[90].mxu1 %vm1005_vm1, %v991_v61 }
 0x155   :  { %3147 = vmatprep.mubr.msk.f32.mxu1 %vm1005_vm1, %v992_v32  ;;  %v4403_v27 = vpop.permute.xlu1 %1669  ;;  %v4405_v1 = vpop.permute.xlu0 %1671 }
 0x158   :  { %3148 = vmatmul.mubr.msk.f32.gmra.mrb[92].mxu1 %vm1005_vm1, %v993_v14 }
 0x159   :  { %3150 = vmatprep.mubr.msk.f32.mxu1 %vm1005_vm1, %v994_v22  ;;  %v4407_v41 = vpop.permute.xlu1 %1673  ;;  %v4409_v58 = vpop.permute.xlu0 %1675 }
 0x15c   :  { %3151 = vmatmul.mubr.msk.f32.gmra.mrb[94].mxu1 %vm1005_vm1, %v995_v38 }
 0x15d   :  { %v4411_v19 = vpop.permute.xlu1 %1677  ;;  %v4413_v31 = vpop.permute.xlu0 %1679 }
 0x161   :  { %v4415_v12 = vpop.permute.xlu1 %1681  ;;  %v4417_v52 = vpop.permute.xlu0 %1683 }
 0x165   :  { %v4419_v63 = vpop.permute.xlu1 %1685  ;;  %v4427_v42 = vpop.permute.xlu0 %1687 }
 0x169   :  { %v4430_v11 = vpop.permute.xlu1 %1689  ;;  %v4434_v18 = vpop.permute.xlu0 %1691 }
 0x16d   :  { %v4437_v24 = vpop.permute.xlu1 %1693  ;;  %v4445_v21 = vpop.permute.xlu0 %1695 }
 0x171   :  { %v4448_v30 = vpop.permute.xlu1 %1697 }
 0x1b3   :  { %v3059_v49 = vpop.f32.mrb[32].mxu1 }
 0x1b4   :  { %v1270_v57 = vadd.f32 %v3059_v49, %v4424_v60  ;;  %v1264_v39 = vpop.f32.mrb[33].mxu1 }
 0x1b5   :  { %v1265_v44 = vadd.f32 %v4424_v60, %v1264_v39 }
 0x1b6   :  { %v1584_v17 = vmax.f32 %v1270_v57, 0.0 }
 0x1b7   :  { %v1583_v8 = vmax.f32 %v1265_v44, 0.0  ;;  %v3062_v46 = vpop.f32.mrb[34].mxu1 }
 0x1b8   :  { %v1280_v25 = vadd.f32 %v3062_v46, %v4424_v60  ;;  %v1274_v9 = vpop.f32.mrb[35].mxu1  ;;  %v1840_v53 = vadd.f32 %v1650_v15, %v1584_v17 }
 0x1b9   :  { %v1839_v37 = vadd.f32 %v1648_v62, %v1583_v8  ;;  %v1275_v45 = vadd.f32 %v4424_v60, %v1274_v9  ;;  %v4455_v62 = vpop.permute.xlu0 %1699 }
 0x1ba   :  { %v1586_v35 = vmax.f32 %v1280_v25, 0.0 }
 0x1bb   :  { %v1585_v33 = vmax.f32 %v1275_v45, 0.0  ;;  %v3065_v48 = vpop.f32.mrb[36].mxu1  ;;  %3161 = vmatprep.mubr.msk.f32.mxu0 %vm1914_vm2, %v1839_v37 }
 0x1bc   :  { %v1290_v34 = vadd.f32 %v3065_v48, %v4424_v60  ;;  %v1284_v23 = vpop.f32.mrb[37].mxu1  ;;  %3162 = vmatmul.mubr.msk.f32.vlgmr.msra.gmra.mrb[32].mxu0 %vm1914_vm2, %v1840_v53  ;;  %v1842_v29 = vadd.f32 %v1654_v3, %v1586_v35  ;;  %v4458_v3 = vpop.permute.xlu1 %1701 }
 0x1bd   :  { %v1841_v6 = vadd.f32 %v1652_v20, %v1585_v33  ;;  %v1285_v28 = vadd.f32 %v4424_v60, %v1284_v23  ;;  %v4468_v46 = vpop.permute.xlu0 %1703 }
 0x1be   :  { %v1588_v55 = vmax.f32 %v1290_v34, 0.0 }
 0x1bf   :  { %v1587_v54 = vmax.f32 %v1285_v28, 0.0  ;;  %v3068_v56 = vpop.f32.mrb[38].mxu1  ;;  %3164 = vmatprep.mubr.msk.f32.mxu0 %vm1914_vm2, %v1841_v6 }
 0x1c0   :  { %v1300_v5 = vadd.f32 %v3068_v56, %v4424_v60  ;;  %v1294_v43 = vpop.f32.mrb[39].mxu1  ;;  %3165 = vmatmul.mubr.msk.f32.gmra.mrb[34].mxu0 %vm1914_vm2, %v1842_v29  ;;  %v1844_v32 = vadd.f32 %v1658_v26, %v1588_v55  ;;  %v4472_v9 = vpop.permute.xlu1 %1705 }
 0x1c1   :  { %v1843_v4 = vadd.f32 %v1656_v7, %v1587_v54  ;;  %v1295_v40 = vadd.f32 %v4424_v60, %v1294_v43  ;;  %v4481_v6 = vpop.permute.xlu0 %1707 }
 0x1c2   :  { %v1590_v47 = vmax.f32 %v1300_v5, 0.0 }
 0x1c3   :  { %v1589_v61 = vmax.f32 %v1295_v40, 0.0  ;;  %v3071_v13 = vpop.f32.mrb[40].mxu1  ;;  %3167 = vmatprep.mubr.msk.f32.mxu0 %vm1914_vm2, %v1843_v4 }
 0x1c4   :  { %v1310_v50 = vadd.f32 %v3071_v13, %v4424_v60  ;;  %v1304_v22 = vpop.f32.mrb[41].mxu1  ;;  %3168 = vmatmul.mubr.msk.f32.gmra.mrb[36].mxu0 %vm1914_vm2, %v1844_v32  ;;  %v1846_v51 = vadd.f32 %v4395_v0, %v1590_v47  ;;  %v4484_v29 = vpop.permute.xlu1 %1709 }
 0x1c5   :  { %v1845_v10 = vadd.f32 %v1660_v36, %v1589_v61  ;;  %v1305_v14 = vadd.f32 %v4424_v60, %v1304_v22  ;;  %v4494_v47 = vpop.permute.xlu0 %1711 }
 0x1c6   :  { %v1592_v38 = vmax.f32 %v1310_v50, 0.0 }
 0x1c7   :  { %v1591_v15 = vmax.f32 %v1305_v14, 0.0  ;;  %v3074_v20 = vpop.f32.mrb[42].mxu1  ;;  %3170 = vmatprep.mubr.msk.f32.mxu0 %vm1914_vm2, %v1845_v10 }
 0x1c8   :  { %v1320_v7 = vadd.f32 %v3074_v20, %v4424_v60  ;;  %v1314_v26 = vpop.f32.mrb[43].mxu1  ;;  %3171 = vmatmul.mubr.msk.f32.gmra.mrb[38].mxu0 %vm1914_vm2, %v1846_v51  ;;  %v1848_v0 = vadd.f32 %v4399_v16, %v1592_v38  ;;  %v4498_v13 = vpop.permute.xlu1 %1713 }
 0x1c9   :  { %v1847_v36 = vadd.f32 %v4397_v59, %v1591_v15  ;;  %v1315_v49 = vadd.f32 %v4424_v60, %v1314_v26 }
 0x1ca   :  { %v1594_v57 = vmax.f32 %v1320_v7, 0.0  ;;  %v4507_v7 = vpop.permute.xlu0 %1715 }
 0x1cb   :  { %v1593_v39 = vmax.f32 %v1315_v49, 0.0  ;;  %v3077_v44 = vpop.f32.mrb[44].mxu1  ;;  %3173 = vmatprep.mubr.msk.f32.mxu0 %vm1914_vm2, %v1847_v36 }
 0x1cc   :  { %v1330_v17 = vadd.f32 %v3077_v44, %v4424_v60  ;;  %v1324_v8 = vpop.f32.mrb[45].mxu1  ;;  %3174 = vmatmul.mubr.msk.f32.gmra.mrb[40].mxu0 %vm1914_vm2, %v1848_v0  ;;  %v1850_v16 = vadd.f32 %v4403_v27, %v1594_v57  ;;  %v4510_v36 = vpop.permute.xlu1 %1717 }
 0x1cd   :  { %v1849_v25 = vadd.f32 %v4401_v2, %v1593_v39  ;;  %v1325_v59 = vadd.f32 %v4424_v60, %v1324_v8 }
 0x1ce   :  { %v1596_v37 = vmax.f32 %v1330_v17, 0.0 }
 0x1cf   :  { %v1595_v45 = vmax.f32 %v1325_v59, 0.0  ;;  %v3080_v53 = vpop.f32.mrb[46].mxu1  ;;  %3176 = vmatprep.mubr.msk.f32.mxu0 %vm1914_vm2, %v1849_v25  ;;  %v4520_v59 = vpop.permute.xlu0 %1719 }
 0x1d0   :  { %v1340_v35 = vadd.f32 %v3080_v53, %v4424_v60  ;;  %v1334_v33 = vpop.f32.mrb[47].mxu1  ;;  %3177 = vmatmul.mubr.msk.f32.gmra.mrb[42].mxu0 %vm1914_vm2, %v1850_v16  ;;  %v1852_v34 = vadd.f32 %v4407_v41, %v1596_v37  ;;  %v4524_v37 = vpop.permute.xlu1 %1721 }
 0x1d1   :  { %v1851_v48 = vadd.f32 %v4405_v1, %v1595_v45  ;;  %v1335_v2 = vadd.f32 %v4424_v60, %v1334_v33 }
 0x1d2   :  { %v1598_v23 = vmax.f32 %v1340_v35, 0.0 }
 0x1d3   :  { %v1597_v27 = vmax.f32 %v1335_v2, 0.0  ;;  %v3083_v28 = vpop.f32.mrb[48].mxu1  ;;  %3179 = vmatprep.mubr.msk.f32.mxu0 %vm1914_vm2, %v1851_v48 }
 0x1d4   :  { %v1350_v55 = vadd.f32 %v3083_v28, %v4424_v60  ;;  %v1344_v54 = vpop.f32.mrb[49].mxu1  ;;  %3180 = vmatmul.mubr.msk.f32.gmra.mrb[44].mxu0 %vm1914_vm2, %v1852_v34  ;;  %v1854_v41 = vadd.f32 %v4411_v19, %v1598_v23 }
 0x1d5   :  { %v1853_v1 = vadd.f32 %v4409_v58, %v1597_v27  ;;  %v1345_v56 = vadd.f32 %v4424_v60, %v1344_v54  ;;  %v4533_v27 = vpop.permute.xlu0 %1723 }
 0x1d6   :  { %v1600_v5 = vmax.f32 %v1350_v55, 0.0  ;;  %v4536_v55 = vpop.permute.xlu1 %1725 }
 0x1d7   :  { %v1599_v43 = vmax.f32 %v1345_v56, 0.0  ;;  %v3086_v4 = vpop.f32.mrb[50].mxu1  ;;  %3182 = vmatprep.mubr.msk.f32.mxu0 %vm1914_vm2, %v1853_v1 }
 0x1d8   :  { %v1360_v40 = vadd.f32 %v3086_v4, %v4424_v60  ;;  %v1354_v32 = vpop.f32.mrb[51].mxu1  ;;  %3183 = vmatmul.mubr.msk.f32.gmra.mrb[46].mxu0 %vm1914_vm2, %v1854_v41  ;;  %v1856_v19 = vadd.f32 %v4415_v12, %v1600_v5 }
 0x1d9   :  { %v1855_v61 = vadd.f32 %v4413_v31, %v1599_v43  ;;  %v1355_v58 = vadd.f32 %v4424_v60, %v1354_v32  ;;  %v4546_v32 = vpop.permute.xlu0 %1727 }
 0x1da   :  { %v1602_v50 = vmax.f32 %v1360_v40, 0.0 }
 0x1db   :  { %v1601_v22 = vmax.f32 %v1355_v58, 0.0  ;;  %v3089_v10 = vpop.f32.mrb[52].mxu1  ;;  %3185 = vmatprep.mubr.msk.f32.mxu0 %vm1914_vm2, %v1855_v61  ;;  %v4550_v58 = vpop.permute.xlu1 %1729 }
 0x1dc   :  { %v1370_v14 = vadd.f32 %v3089_v10, %v4424_v60  ;;  %v1364_v51 = vpop.f32.mrb[53].mxu1  ;;  %3186 = vmatmul.mubr.msk.f32.gmra.mrb[48].mxu0 %vm1914_vm2, %v1856_v19  ;;  %v1858_v15 = vadd.f32 %v4419_v63, %v1602_v50 }
 0x1dd   :  { %v1857_v38 = vadd.f32 %v4417_v52, %v1601_v22  ;;  %v1365_v31 = vadd.f32 %v4424_v60, %v1364_v51 }
 0x1de   :  { %v1604_v20 = vmax.f32 %v1370_v14, 0.0 }
 0x1df   :  { %v1603_v12 = vmax.f32 %v1365_v31, 0.0  ;;  %v3092_v26 = vpop.f32.mrb[54].mxu1  ;;  %3188 = vmatprep.mubr.msk.f32.mxu0 %vm1914_vm2, %v1857_v38 }
 0x1e0   :  { %v1380_v49 = vadd.f32 %v3092_v26, %v4424_v60  ;;  %v1374_v0 = vpop.f32.mrb[55].mxu1  ;;  %3189 = vmatmul.mubr.msk.f32.gmra.mrb[50].mxu0 %vm1914_vm2, %v1858_v15  ;;  %v1860_v63 = vadd.f32 %v4430_v11, %v1604_v20  ;;  %v4559_v15 = vpop.permute.xlu0 %1731 }
 0x1e1   :  { %v1859_v52 = vadd.f32 %v4427_v42, %v1603_v12  ;;  %v1375_v57 = vadd.f32 %v4424_v60, %v1374_v0  ;;  %v1734_v12 = vpop.permute.xlu1 %1733 }
 0x1e2   :  { %v1606_v39 = vmax.f32 %v1380_v49, 0.0 }
 0x1e3   :  { %v1605_v44 = vmax.f32 %v1375_v57, 0.0  ;;  %v3095_v17 = vpop.f32.mrb[56].mxu1  ;;  %3191 = vmatprep.mubr.msk.f32.mxu0 %vm1914_vm2, %v1859_v52 }
 0x1e4   :  { %v1390_v8 = vadd.f32 %v3095_v17, %v4424_v60  ;;  %v1384_v25 = vpop.f32.mrb[57].mxu1  ;;  %3192 = vmatmul.mubr.msk.f32.gmra.mrb[52].mxu0 %vm1914_vm2, %v1860_v63  ;;  %v1862_v11 = vadd.f32 %v4437_v24, %v1606_v39  ;;  %v1736_v17 = vpop.permute.xlu0 %1735 }
 0x1e5   :  { %v1861_v16 = vadd.f32 %v4434_v18, %v1605_v44  ;;  %v1385_v42 = vadd.f32 %v4424_v60, %v1384_v25 }
 0x1e6   :  { %v1608_v45 = vmax.f32 %v1390_v8, 0.0 }
 0x1e7   :  { %v1607_v53 = vmax.f32 %v1385_v42, 0.0  ;;  %v3098_v35 = vpop.f32.mrb[58].mxu1  ;;  %3194 = vmatprep.mubr.msk.f32.mxu0 %vm1914_vm2, %v1861_v16 }
 0x1e8   :  { %v1400_v33 = vadd.f32 %v3098_v35, %v4424_v60  ;;  %v1394_v48 = vpop.f32.mrb[59].mxu1  ;;  %3195 = vmatmul.mubr.msk.f32.gmra.mrb[54].mxu0 %vm1914_vm2, %v1862_v11  ;;  %v1864_v34 = vadd.f32 %v4448_v30, %v1608_v45 }
 0x1e9   :  { %v1863_v2 = vadd.f32 %v4445_v21, %v1607_v53  ;;  %v1395_v18 = vadd.f32 %v4424_v60, %v1394_v48 }
 0x1ea   :  { %v1610_v23 = vmax.f32 %v1400_v33, 0.0 }
 0x1eb   :  { %v1609_v24 = vmax.f32 %v1395_v18, 0.0  ;;  %v3101_v28 = vpop.f32.mrb[60].mxu1  ;;  %3197 = vmatprep.mubr.msk.f32.mxu0 %vm1914_vm2, %v1863_v2  ;;  %v1740_v2 = vpop.permute.xlu0 %1739 }
 0x1ec   :  { %v1410_v54 = vadd.f32 %v3101_v28, %v4424_v60  ;;  %v1404_v1 = vpop.f32.mrb[61].mxu1  ;;  %3198 = vmatmul.mubr.msk.f32.gmra.mrb[56].mxu0 %vm1914_vm2, %v1864_v34  ;;  %v1866_v30 = vadd.f32 %v4458_v3, %v1610_v23 }
 0x1ed   :  { %v1865_v21 = vadd.f32 %v4455_v62, %v1609_v24  ;;  %v1405_v56 = vadd.f32 %v4424_v60, %v1404_v1 }
 0x1ee   :  { %v1612_v41 = vmax.f32 %v1410_v54, 0.0 }
 0x1ef   :  { %v1611_v5 = vmax.f32 %v1405_v56, 0.0  ;;  %v3104_v43 = vpop.f32.mrb[62].mxu1  ;;  %3200 = vmatprep.mubr.msk.f32.mxu0 %vm1914_vm2, %v1865_v21 }
 0x1f0   :  { %v1420_v4 = vadd.f32 %v3104_v43, %v4424_v60  ;;  %v1414_v40 = vpop.f32.mrb[63].mxu1  ;;  %3201 = vmatmul.mubr.msk.f32.gmra.mrb[58].mxu0 %vm1914_vm2, %v1866_v30  ;;  %v1868_v3 = vadd.f32 %v4472_v9, %v1612_v41  ;;  %v1744_v41 = vpop.permute.xlu0 %1743 }
 0x1f1   :  { %v1867_v61 = vadd.f32 %v4468_v46, %v1611_v5  ;;  %v1415_v62 = vadd.f32 %v4424_v60, %v1414_v40 }
 0x1f2   :  { %v1614_v19 = vmax.f32 %v1420_v4, 0.0 }
 0x1f3   :  { %v1613_v50 = vmax.f32 %v1415_v62, 0.0  ;;  %v3107_v22 = vpop.f32.mrb[64].mxu1  ;;  %3203 = vmatprep.mubr.msk.f32.mxu0 %vm1914_vm2, %v1867_v61 }
 0x1f4   :  { %v1430_v10 = vadd.f32 %v3107_v22, %v4424_v60  ;;  %v1424_v14 = vpop.f32.mrb[65].mxu1  ;;  %3204 = vmatmul.mubr.msk.f32.gmra.mrb[60].mxu0 %vm1914_vm2, %v1868_v3  ;;  %v1870_v38 = vadd.f32 %v4484_v29, %v1614_v19 }
 0x1f5   :  { %v1869_v51 = vadd.f32 %v4481_v6, %v1613_v50  ;;  %v1425_v46 = vadd.f32 %v4424_v60, %v1424_v14 }
 0x1f6   :  { %v1616_v31 = vmax.f32 %v1430_v10, 0.0  ;;  %v1748_v10 = vpop.permute.xlu0 %1747 }
 0x1f7   :  { %v1615_v9 = vmax.f32 %v1425_v46, 0.0  ;;  %v3110_v20 = vpop.f32.mrb[66].mxu1  ;;  %3206 = vmatprep.mubr.msk.f32.mxu0 %vm1914_vm2, %v1869_v51 }
 0x1f8   :  { %v1440_v26 = vadd.f32 %v3110_v20, %v4424_v60  ;;  %v1434_v49 = vpop.f32.mrb[67].mxu1  ;;  %3207 = vmatmul.mubr.msk.f32.gmra.mrb[62].mxu0 %vm1914_vm2, %v1870_v38  ;;  %v1872_v52 = vadd.f32 %v4498_v13, %v1616_v31 }
 0x1f9   :  { %v1871_v0 = vadd.f32 %v4494_v47, %v1615_v9  ;;  %v1435_v6 = vadd.f32 %v4424_v60, %v1434_v49  ;;  %v1738_v47 = vpop.permute.xlu1 %1737 }
 0x1fa   :  { %v1618_v29 = vmax.f32 %v1440_v26, 0.0 }
 0x1fb   :  { %v1617_v57 = vmax.f32 %v1435_v6, 0.0  ;;  %v3113_v63 = vpop.f32.mrb[68].mxu1  ;;  %3209 = vmatprep.mubr.msk.f32.mxu0 %vm1914_vm2, %v1871_v0  ;;  %v1752_v6 = vpop.permute.xlu0 %1751 }
 0x1fc   :  { %v1450_v39 = vadd.f32 %v3113_v63, %v4424_v60  ;;  %v1444_v44 = vpop.f32.mrb[69].mxu1  ;;  %3210 = vmatmul.mubr.msk.f32.gmra.mrb[64].mxu0 %vm1914_vm2, %v1872_v52  ;;  %v1874_v16 = vadd.f32 %v4510_v36, %v1618_v29 }
 0x1fd   :  { %v1873_v8 = vadd.f32 %v4507_v7, %v1617_v57  ;;  %v1445_v25 = vadd.f32 %v4424_v60, %v1444_v44  ;;  %v1742_v34 = vpop.permute.xlu1 %1741 }
 0x1fe   :  { %v1620_v42 = vmax.f32 %v1450_v39, 0.0 }
 0x1ff   :  { %v1619_v13 = vmax.f32 %v1445_v25, 0.0  ;;  %v3116_v11 = vpop.f32.mrb[70].mxu1  ;;  %3212 = vmatprep.mubr.msk.f32.mxu0 %vm1914_vm2, %v1873_v8 }
 0x200   :  { %v1460_v45 = vadd.f32 %v3116_v11, %v4424_v60  ;;  %v1454_v53 = vpop.f32.mrb[71].mxu1  ;;  %3213 = vmatmul.mubr.msk.f32.gmra.mrb[66].mxu0 %vm1914_vm2, %v1874_v16  ;;  %v1876_v7 = vadd.f32 %v4524_v37, %v1620_v42  ;;  %v1756_v11 = vpop.permute.xlu0 %1755 }
 0x201   :  { %v1875_v35 = vadd.f32 %v4520_v59, %v1619_v13  ;;  %v1455_v33 = vadd.f32 %v4424_v60, %v1454_v53 }
 0x202   :  { %v1622_v48 = vmax.f32 %v1460_v45, 0.0 }
 0x203   :  { %v1621_v18 = vmax.f32 %v1455_v33, 0.0  ;;  %v3119_v36 = vpop.f32.mrb[72].mxu1  ;;  %3215 = vmatprep.mubr.msk.f32.mxu0 %vm1914_vm2, %v1875_v35 }
 0x204   :  { %v1470_v23 = vadd.f32 %v3119_v36, %v4424_v60  ;;  %v1464_v24 = vpop.f32.mrb[73].mxu1  ;;  %3216 = vmatmul.mubr.msk.f32.gmra.mrb[68].mxu0 %vm1914_vm2, %v1876_v7  ;;  %v1878_v54 = vadd.f32 %v4536_v55, %v1622_v48 }
 0x205   :  { %v1877_v28 = vadd.f32 %v4533_v27, %v1621_v18  ;;  %v1465_v59 = vadd.f32 %v4424_v60, %v1464_v24  ;;  %v1746_v27 = vpop.permute.xlu1 %1745 }
 0x206   :  { %v1624_v1 = vmax.f32 %v1470_v23, 0.0 }
 0x207   :  { %v1623_v37 = vmax.f32 %v1465_v59, 0.0  ;;  %v3122_v21 = vpop.f32.mrb[74].mxu1  ;;  %3218 = vmatprep.mubr.msk.f32.mxu0 %vm1914_vm2, %v1877_v28  ;;  %v1760_v59 = vpop.permute.xlu0 %1759 }
 0x208   :  { %v1480_v56 = vadd.f32 %v3122_v21, %v4424_v60  ;;  %v1474_v30 = vpop.f32.mrb[75].mxu1  ;;  %3219 = vmatmul.mubr.msk.f32.gmra.mrb[70].mxu0 %vm1914_vm2, %v1878_v54  ;;  %v1880_v4 = vadd.f32 %v4550_v58, %v1624_v1 }
 0x209   :  { %v1879_v5 = vadd.f32 %v4546_v32, %v1623_v37  ;;  %v1475_v43 = vadd.f32 %v4424_v60, %v1474_v30  ;;  %v1750_v58 = vpop.permute.xlu1 %1749 }
 0x20a   :  { %v1626_v40 = vmax.f32 %v1480_v56, 0.0 }
 0x20b   :  { %v1625_v55 = vmax.f32 %v1475_v43, 0.0  ;;  %v3125_v61 = vpop.f32.mrb[76].mxu1  ;;  %3221 = vmatprep.mubr.msk.f32.mxu0 %vm1914_vm2, %v1879_v5 }
 0x20c   :  { %v1490_v62 = vadd.f32 %v3125_v61, %v4424_v60  ;;  %v1484_v3 = vpop.f32.mrb[77].mxu1  ;;  %3222 = vmatmul.mubr.msk.f32.gmra.mrb[72].mxu0 %vm1914_vm2, %v1880_v4  ;;  %v1882_v32 = vadd.f32 %v1734_v12, %v1626_v40  ;;  %v1764_v61 = vpop.permute.xlu0 %1763 }
 0x20d   :  { %v1881_v19 = vadd.f32 %v4559_v15, %v1625_v55  ;;  %v1485_v50 = vadd.f32 %v4424_v60, %v1484_v3  ;;  %v1754_v57 = vpop.permute.xlu1 %1753 }
 0x20e   :  { %v1628_v22 = vmax.f32 %v1490_v62, 0.0 }
 0x20f   :  { %v1627_v14 = vmax.f32 %v1485_v50, 0.0  ;;  %v3128_v51 = vpop.f32.mrb[78].mxu1  ;;  %3224 = vmatprep.mubr.msk.f32.mxu0 %vm1914_vm2, %v1881_v19 }
 0x210   :  { %v1500_v46 = vadd.f32 %v3128_v51, %v4424_v60  ;;  %v1494_v38 = vpop.f32.mrb[79].mxu1  ;;  %3225 = vmatmul.mubr.msk.f32.gmra.mrb[74].mxu0 %vm1914_vm2, %v1882_v32  ;;  %v1884_v20 = vadd.f32 %v1738_v47, %v1628_v22 }
 0x211   :  { %v1883_v31 = vadd.f32 %v1736_v17, %v1627_v14  ;;  %v1495_v9 = vadd.f32 %v4424_v60, %v1494_v38  ;;  %v1758_v35 = vpop.permute.xlu1 %1757 }
 0x212   :  { %v1630_v15 = vmax.f32 %v1500_v46, 0.0 }
 0x213   :  { %v1629_v26 = vmax.f32 %v1495_v9, 0.0  ;;  %v3131_v49 = vpop.f32.mrb[80].mxu1  ;;  %3227 = vmatprep.mubr.msk.f32.mxu0 %vm1914_vm2, %v1883_v31  ;;  %v1768_v9 = vpop.permute.xlu0 %1767 }
 0x214   :  { %v1510_v12 = vadd.f32 %v3131_v49, %v4424_v60  ;;  %v1504_v0 = vpop.f32.mrb[81].mxu1  ;;  %3228 = vmatmul.mubr.msk.f32.gmra.mrb[76].mxu0 %vm1914_vm2, %v1884_v20  ;;  %v1886_v63 = vadd.f32 %v1742_v34, %v1630_v15 }
 0x215   :  { %v1885_v52 = vadd.f32 %v1740_v2, %v1629_v26  ;;  %v1505_v29 = vadd.f32 %v4424_v60, %v1504_v0  ;;  %v1762_v37 = vpop.permute.xlu1 %1761 }
 0x216   :  { %v1632_v39 = vmax.f32 %v1510_v12, 0.0 }
 0x217   :  { %v1631_v44 = vmax.f32 %v1505_v29, 0.0  ;;  %v3134_v17 = vpop.f32.mrb[82].mxu1  ;;  %3230 = vmatprep.mubr.msk.f32.mxu0 %vm1914_vm2, %v1885_v52 }
 0x218   :  { %v1520_v8 = vadd.f32 %v3134_v17, %v4424_v60  ;;  %v1514_v25 = vpop.f32.mrb[83].mxu1  ;;  %3231 = vmatmul.mubr.msk.f32.gmra.mrb[78].mxu0 %vm1914_vm2, %v1886_v63  ;;  %v1888_v42 = vadd.f32 %v1746_v27, %v1632_v39  ;;  %v1772_v17 = vpop.permute.xlu0 %1771 }
 0x219   :  { %v1887_v47 = vadd.f32 %v1744_v41, %v1631_v44  ;;  %v1515_v16 = vadd.f32 %v4424_v60, %v1514_v25  ;;  %v1766_v19 = vpop.permute.xlu1 %1765 }
 0x21a   :  { %v1634_v13 = vmax.f32 %v1520_v8, 0.0 }
 0x21b   :  { %v1633_v45 = vmax.f32 %v1515_v16, 0.0  ;;  %v3137_v53 = vpop.f32.mrb[84].mxu1  ;;  %3233 = vmatprep.mubr.msk.f32.mxu0 %vm1914_vm2, %v1887_v47 }
 0x21c   :  { %v1530_v33 = vadd.f32 %v3137_v53, %v4424_v60  ;;  %v1524_v7 = vpop.f32.mrb[85].mxu1  ;;  %3234 = vmatmul.mubr.msk.f32.gmra.mrb[80].mxu0 %vm1914_vm2, %v1888_v42  ;;  %v1890_v18 = vadd.f32 %v1750_v58, %v1634_v13  ;;  %v4639_v42 = vld [vmem:[%s4967_s6] ss:$0 sm:$0xff] }
 0x21d   :  { %v1889_v48 = vadd.f32 %v1748_v10, %v1633_v45  ;;  %v1525_v2 = vadd.f32 %v4424_v60, %v1524_v7  ;;  %v1770_v26 = vpop.permute.xlu1 %1769 }
 0x21e   :  { %v1636_v36 = vmax.f32 %v1530_v33, 0.0 }
 0x21f   :  { %v1635_v34 = vmax.f32 %v1525_v2, 0.0  ;;  %v3140_v23 = vpop.f32.mrb[86].mxu1  ;;  %3236 = vmatprep.mubr.msk.f32.mxu0 %vm1914_vm2, %v1889_v48 }
 0x220   :  { %v1540_v24 = vadd.f32 %v3140_v23, %v4424_v60  ;;  %v1534_v28 = vpop.f32.mrb[87].mxu1  ;;  %3237 = vmatmul.mubr.msk.f32.gmra.mrb[82].mxu0 %vm1914_vm2, %v1890_v18  ;;  %v1892_v21 = vadd.f32 %v1754_v57, %v1636_v36 }
 0x221   :  { %v1891_v54 = vadd.f32 %v1752_v6, %v1635_v34  ;;  %v1535_v1 = vadd.f32 %v4424_v60, %v1534_v28  ;;  %v1774_v25 = vpop.permute.xlu1 %1773 }
 0x222   :  { %v1638_v56 = vmax.f32 %v1540_v24, 0.0 }
 0x223   :  { %v1637_v30 = vmax.f32 %v1535_v1, 0.0  ;;  %v3143_v41 = vpop.f32.mrb[88].mxu1  ;;  %3239 = vmatprep.mubr.msk.f32.mxu0 %vm1914_vm2, %v1891_v54 }
 0x224   :  { %v1550_v5 = vadd.f32 %v3143_v41, %v4424_v60  ;;  %v1544_v43 = vpop.f32.mrb[89].mxu1  ;;  %3240 = vmatmul.mubr.msk.f32.gmra.mrb[84].mxu0 %vm1914_vm2, %v1892_v21  ;;  %v1894_v40 = vadd.f32 %v1758_v35, %v1638_v56 }
 0x225   :  { %v1893_v27 = vadd.f32 %v1756_v11, %v1637_v30  ;;  %v1545_v4 = vadd.f32 %v4424_v60, %v1544_v43 }
 0x226   :  { %v1640_v55 = vmax.f32 %v1550_v5, 0.0 }
 0x227   :  { %v1639_v62 = vmax.f32 %v1545_v4, 0.0  ;;  %v3146_v3 = vpop.f32.mrb[90].mxu1  ;;  %3242 = vmatprep.mubr.msk.f32.mxu0 %vm1914_vm2, %v1893_v27 }
 0x228   :  { %v1560_v50 = vadd.f32 %v3146_v3, %v4424_v60  ;;  %v1554_v32 = vpop.f32.mrb[91].mxu1  ;;  %3243 = vmatmul.mubr.msk.f32.gmra.mrb[86].mxu0 %vm1914_vm2, %v1894_v40  ;;  %v1896_v14 = vadd.f32 %v1762_v37, %v1640_v55 }
 0x229   :  { %v1895_v22 = vadd.f32 %v1760_v59, %v1639_v62  ;;  %v1555_v10 = vadd.f32 %v4424_v60, %v1554_v32 }
 0x22a   :  { %v1642_v51 = vmax.f32 %v1560_v50, 0.0 }
 0x22b   :  { %v1641_v58 = vmax.f32 %v1555_v10, 0.0  ;;  %v3149_v46 = vpop.f32.mrb[92].mxu1  ;;  %3245 = vmatprep.mubr.msk.f32.mxu0 %vm1914_vm2, %v1895_v22 }
 0x22c   :  { %v1570_v38 = vadd.f32 %v3149_v46, %v4424_v60  ;;  %v1564_v31 = vpop.f32.mrb[93].mxu1  ;;  %3246 = vmatmul.mubr.msk.f32.gmra.mrb[88].mxu0 %vm1914_vm2, %v1896_v14  ;;  %v1898_v49 = vadd.f32 %v1766_v19, %v1642_v51 }
 0x22d   :  { %v1897_v20 = vadd.f32 %v1764_v61, %v1641_v58  ;;  %v1565_v15 = vadd.f32 %v4424_v60, %v1564_v31 }
 0x22e   :  { %v1644_v12 = vmax.f32 %v1570_v38, 0.0 }
 0x22f   :  { %v1643_v0 = vmax.f32 %v1565_v15, 0.0  ;;  %v3152_v6 = vpop.f32.mrb[94].mxu1  ;;  %3248 = vmatprep.mubr.msk.f32.mxu0 %vm1914_vm2, %v1897_v20 }
 0x230   :  { %v1580_v52 = vadd.f32 %v3152_v6, %v4424_v60  ;;  %v1574_v29 = vpop.f32.mrb[95].mxu1  ;;  %3249 = vmatmul.mubr.msk.f32.gmra.mrb[90].mxu0 %vm1914_vm2, %v1898_v49  ;;  %v1900_v39 = vadd.f32 %v1770_v26, %v1644_v12 }
 0x231   :  { %v1899_v57 = vadd.f32 %v1768_v9, %v1643_v0  ;;  %v1575_v63 = vadd.f32 %v4424_v60, %v1574_v29 }
 0x232   :  { %v1646_v44 = vmax.f32 %v1580_v52, 0.0 }
 0x233   :  { %v1645_v8 = vmax.f32 %v1575_v63, 0.0  ;;  %3251 = vmatprep.mubr.msk.f32.mxu0 %vm1914_vm2, %v1899_v57 }
 0x234   :  { %3252 = vmatmul.mubr.msk.f32.gmra.mrb[92].mxu0 %vm1914_vm2, %v1900_v39  ;;  %v1902_v16 = vadd.f32 %v1774_v25, %v1646_v44 }
 0x235   :  { %v1901_v47 = vadd.f32 %v1772_v17, %v1645_v8 }
 0x237   :  { %3254 = vmatprep.mubr.msk.f32.mxu0 %vm1914_vm2, %v1901_v47 }
 0x238   :  { %3255 = vmatmul.mubr.msk.f32.gmra.mrb[94].mxu0 %vm1914_vm2, %v1902_v16 }
 0x28f   :  { %v3163_v60 = vpop.f32.mrb[32].mxu0 }
 0x290   :  { %v2179_v13 = vadd.f32 %v3163_v60, %v4639_v42  ;;  %v2173_v11 = vpop.f32.mrb[33].mxu0 }
 0x291   :  { %v2174_v45 = vadd.f32 %v4639_v42, %v2173_v11 }
 0x292   :  { %2494 = vst.msk [vmem:[%s4968_s7 + $0x8] sm:$0xff] %vm2492_vm3, %v2179_v13 }
 0x293   :  { %2493 = vst.msk [vmem:[%s4968_s7] sm:$0xff] %vm2492_vm3, %v2174_v45  ;;  %v3166_v53 = vpop.f32.mrb[34].mxu0 }
 0x294   :  { %v2189_v35 = vadd.f32 %v3166_v53, %v4639_v42  ;;  %v2183_v33 = vpop.f32.mrb[35].mxu0 }
 0x295   :  { %v2184_v7 = vadd.f32 %v4639_v42, %v2183_v33 }
 0x296   :  { %2496 = vst.msk [vmem:[%s4968_s7 + $0x18] sm:$0xff] %vm2492_vm3, %v2189_v35 }
 0x297   :  { %2495 = vst.msk [vmem:[%s4968_s7 + $0x10] sm:$0xff] %vm2492_vm3, %v2184_v7  ;;  %v3169_v48 = vpop.f32.mrb[36].mxu0 }
 0x298   :  { %v2199_v2 = vadd.f32 %v3169_v48, %v4639_v42  ;;  %v2193_v18 = vpop.f32.mrb[37].mxu0 }
 0x299   :  { %v2194_v36 = vadd.f32 %v4639_v42, %v2193_v18 }
 0x29a   :  { %2498 = vst.msk [vmem:[%s4968_s7 + $0x28] sm:$0xff] %vm2492_vm3, %v2199_v2 }
 0x29b   :  { %2497 = vst.msk [vmem:[%s4968_s7 + $0x20] sm:$0xff] %vm2492_vm3, %v2194_v36  ;;  %v3172_v34 = vpop.f32.mrb[38].mxu0 }
 0x29c   :  { %v2209_v23 = vadd.f32 %v3172_v34, %v4639_v42  ;;  %v2203_v24 = vpop.f32.mrb[39].mxu0 }
 0x29d   :  { %v2204_v28 = vadd.f32 %v4639_v42, %v2203_v24 }
 0x29e   :  { %2500 = vst.msk [vmem:[%s4968_s7 + $0x38] sm:$0xff] %vm2492_vm3, %v2209_v23 }
 0x29f   :  { %2499 = vst.msk [vmem:[%s4968_s7 + $0x30] sm:$0xff] %vm2492_vm3, %v2204_v28  ;;  %v3175_v59 = vpop.f32.mrb[40].mxu0 }
 0x2a0   :  { %v2219_v54 = vadd.f32 %v3175_v59, %v4639_v42  ;;  %v2213_v1 = vpop.f32.mrb[41].mxu0 }
 0x2a1   :  { %v2214_v37 = vadd.f32 %v4639_v42, %v2213_v1 }
 0x2a2   :  { %2502 = vst.msk [vmem:[%s4968_s7 + $0x48] sm:$0xff] %vm2492_vm3, %v2219_v54 }
 0x2a3   :  { %2501 = vst.msk [vmem:[%s4968_s7 + $0x40] sm:$0xff] %vm2492_vm3, %v2214_v37  ;;  %v3178_v21 = vpop.f32.mrb[42].mxu0 }
 0x2a4   :  { %v2229_v56 = vadd.f32 %v3178_v21, %v4639_v42  ;;  %v2223_v30 = vpop.f32.mrb[43].mxu0 }
 0x2a5   :  { %v2224_v41 = vadd.f32 %v4639_v42, %v2223_v30 }
 0x2a6   :  { %2504 = vst.msk [vmem:[%s4968_s7 + $0x58] sm:$0xff] %vm2492_vm3, %v2229_v56 }
 0x2a7   :  { %2503 = vst.msk [vmem:[%s4968_s7 + $0x50] sm:$0xff] %vm2492_vm3, %v2224_v41  ;;  %v3181_v5 = vpop.f32.mrb[44].mxu0 }
 0x2a8   :  { %v2239_v43 = vadd.f32 %v3181_v5, %v4639_v42  ;;  %v2233_v27 = vpop.f32.mrb[45].mxu0 }
 0x2a9   :  { %v2234_v4 = vadd.f32 %v4639_v42, %v2233_v27 }
 0x2aa   :  { %2506 = vst.msk [vmem:[%s4968_s7 + $0x68] sm:$0xff] %vm2492_vm3, %v2239_v43 }
 0x2ab   :  { %2505 = vst.msk [vmem:[%s4968_s7 + $0x60] sm:$0xff] %vm2492_vm3, %v2234_v4  ;;  %v3184_v40 = vpop.f32.mrb[46].mxu0 }
 0x2ac   :  { %v2249_v55 = vadd.f32 %v3184_v40, %v4639_v42  ;;  %v2243_v61 = vpop.f32.mrb[47].mxu0 }
 0x2ad   :  { %v2244_v62 = vadd.f32 %v4639_v42, %v2243_v61 }
 0x2ae   :  { %2508 = vst.msk [vmem:[%s4968_s7 + $0x78] sm:$0xff] %vm2492_vm3, %v2249_v55 }
 0x2af   :  { %2507 = vst.msk [vmem:[%s4968_s7 + $0x70] sm:$0xff] %vm2492_vm3, %v2244_v62  ;;  %v3187_v3 = vpop.f32.mrb[48].mxu0 }
 0x2b0   :  { %v2259_v19 = vadd.f32 %v3187_v3, %v4639_v42  ;;  %v2253_v50 = vpop.f32.mrb[49].mxu0 }
 0x2b1   :  { %v2254_v32 = vadd.f32 %v4639_v42, %v2253_v50 }
 0x2b2   :  { %2510 = vst.msk [vmem:[%s4968_s7 + $0x88] sm:$0xff] %vm2492_vm3, %v2259_v19 }
 0x2b3   :  { %2509 = vst.msk [vmem:[%s4968_s7 + $0x80] sm:$0xff] %vm2492_vm3, %v2254_v32  ;;  %v3190_v22 = vpop.f32.mrb[50].mxu0 }
 0x2b4   :  { %v2269_v10 = vadd.f32 %v3190_v22, %v4639_v42  ;;  %v2263_v14 = vpop.f32.mrb[51].mxu0 }
 0x2b5   :  { %v2264_v51 = vadd.f32 %v4639_v42, %v2263_v14 }
 0x2b6   :  { %2512 = vst.msk [vmem:[%s4968_s7 + $0x98] sm:$0xff] %vm2492_vm3, %v2269_v10 }
 0x2b7   :  { %2511 = vst.msk [vmem:[%s4968_s7 + $0x90] sm:$0xff] %vm2492_vm3, %v2264_v51  ;;  %v3193_v58 = vpop.f32.mrb[52].mxu0 }
 0x2b8   :  { %v2279_v46 = vadd.f32 %v3193_v58, %v4639_v42  ;;  %v2273_v38 = vpop.f32.mrb[53].mxu0 }
 0x2b9   :  { %v2274_v31 = vadd.f32 %v4639_v42, %v2273_v38 }
 0x2ba   :  { %2514 = vst.msk [vmem:[%s4968_s7 + $0xa8] sm:$0xff] %vm2492_vm3, %v2279_v46 }
 0x2bb   :  { %2513 = vst.msk [vmem:[%s4968_s7 + $0xa0] sm:$0xff] %vm2492_vm3, %v2274_v31  ;;  %v3196_v9 = vpop.f32.mrb[54].mxu0 }
 0x2bc   :  { %v2289_v20 = vadd.f32 %v3196_v9, %v4639_v42  ;;  %v2283_v15 = vpop.f32.mrb[55].mxu0 }
 0x2bd   :  { %v2284_v26 = vadd.f32 %v4639_v42, %v2283_v15 }
 0x2be   :  { %2516 = vst.msk [vmem:[%s4968_s7 + $0xb8] sm:$0xff] %vm2492_vm3, %v2289_v20 }
 0x2bf   :  { %2515 = vst.msk [vmem:[%s4968_s7 + $0xb0] sm:$0xff] %vm2492_vm3, %v2284_v26  ;;  %v3199_v49 = vpop.f32.mrb[56].mxu0 }
 0x2c0   :  { %v2299_v12 = vadd.f32 %v3199_v49, %v4639_v42  ;;  %v2293_v0 = vpop.f32.mrb[57].mxu0 }
 0x2c1   :  { %v2294_v6 = vadd.f32 %v4639_v42, %v2293_v0 }
 0x2c2   :  { %2518 = vst.msk [vmem:[%s4968_s7 + $0xc8] sm:$0xff] %vm2492_vm3, %v2299_v12 }
 0x2c3   :  { %2517 = vst.msk [vmem:[%s4968_s7 + $0xc0] sm:$0xff] %vm2492_vm3, %v2294_v6  ;;  %v3202_v52 = vpop.f32.mrb[58].mxu0 }
 0x2c4   :  { %v2309_v29 = vadd.f32 %v3202_v52, %v4639_v42  ;;  %v2303_v57 = vpop.f32.mrb[59].mxu0 }
 0x2c5   :  { %v2304_v63 = vadd.f32 %v4639_v42, %v2303_v57 }
 0x2c6   :  { %2520 = vst.msk [vmem:[%s4968_s7 + $0xd8] sm:$0xff] %vm2492_vm3, %v2309_v29 }
 0x2c7   :  { %2519 = vst.msk [vmem:[%s4968_s7 + $0xd0] sm:$0xff] %vm2492_vm3, %v2304_v63  ;;  %v3205_v39 = vpop.f32.mrb[60].mxu0 }
 0x2c8   :  { %v2319_v44 = vadd.f32 %v3205_v39, %v4639_v42  ;;  %v2313_v17 = vpop.f32.mrb[61].mxu0 }
 0x2c9   :  { %v2314_v8 = vadd.f32 %v4639_v42, %v2313_v17 }
 0x2ca   :  { %2522 = vst.msk [vmem:[%s4968_s7 + $0xe8] sm:$0xff] %vm2492_vm3, %v2319_v44 }
 0x2cb   :  { %2521 = vst.msk [vmem:[%s4968_s7 + $0xe0] sm:$0xff] %vm2492_vm3, %v2314_v8  ;;  %v3208_v25 = vpop.f32.mrb[62].mxu0 }
 0x2cc   :  { %v2329_v47 = vadd.f32 %v3208_v25, %v4639_v42  ;;  %v2323_v16 = vpop.f32.mrb[63].mxu0 }
 0x2cd   :  { %v2324_v60 = vadd.f32 %v4639_v42, %v2323_v16 }
 0x2ce   :  { %2524 = vst.msk [vmem:[%s4968_s7 + $0xf8] sm:$0xff] %vm2492_vm3, %v2329_v47 }
 0x2cf   :  { %2523 = vst.msk [vmem:[%s4968_s7 + $0xf0] sm:$0xff] %vm2492_vm3, %v2324_v60  ;;  %v3211_v13 = vpop.f32.mrb[64].mxu0 }
 0x2d0   :  { %v2339_v11 = vadd.f32 %v3211_v13, %v4639_v42  ;;  %v2333_v45 = vpop.f32.mrb[65].mxu0 }
 0x2d1   :  { %v2334_v53 = vadd.f32 %v4639_v42, %v2333_v45 }
 0x2d2   :  { %2526 = vst.msk [vmem:[%s4968_s7 + $0x108] sm:$0xff] %vm2492_vm3, %v2339_v11 }
 0x2d3   :  { %2525 = vst.msk [vmem:[%s4968_s7 + $0x100] sm:$0xff] %vm2492_vm3, %v2334_v53  ;;  %v3214_v35 = vpop.f32.mrb[66].mxu0 }
 0x2d4   :  { %v2349_v33 = vadd.f32 %v3214_v35, %v4639_v42  ;;  %v2343_v7 = vpop.f32.mrb[67].mxu0 }
 0x2d5   :  { %v2344_v48 = vadd.f32 %v4639_v42, %v2343_v7 }
 0x2d6   :  { %2528 = vst.msk [vmem:[%s4968_s7 + $0x118] sm:$0xff] %vm2492_vm3, %v2349_v33 }
 0x2d7   :  { %2527 = vst.msk [vmem:[%s4968_s7 + $0x110] sm:$0xff] %vm2492_vm3, %v2344_v48  ;;  %v3217_v2 = vpop.f32.mrb[68].mxu0 }
 0x2d8   :  { %v2359_v18 = vadd.f32 %v3217_v2, %v4639_v42  ;;  %v2353_v36 = vpop.f32.mrb[69].mxu0 }
 0x2d9   :  { %v2354_v34 = vadd.f32 %v4639_v42, %v2353_v36 }
 0x2da   :  { %2530 = vst.msk [vmem:[%s4968_s7 + $0x128] sm:$0xff] %vm2492_vm3, %v2359_v18 }
 0x2db   :  { %2529 = vst.msk [vmem:[%s4968_s7 + $0x120] sm:$0xff] %vm2492_vm3, %v2354_v34  ;;  %v3220_v23 = vpop.f32.mrb[70].mxu0 }
 0x2dc   :  { %v2369_v24 = vadd.f32 %v3220_v23, %v4639_v42  ;;  %v2363_v28 = vpop.f32.mrb[71].mxu0 }
 0x2dd   :  { %v2364_v59 = vadd.f32 %v4639_v42, %v2363_v28 }
 0x2de   :  { %2532 = vst.msk [vmem:[%s4968_s7 + $0x138] sm:$0xff] %vm2492_vm3, %v2369_v24 }
 0x2df   :  { %2531 = vst.msk [vmem:[%s4968_s7 + $0x130] sm:$0xff] %vm2492_vm3, %v2364_v59  ;;  %v3223_v54 = vpop.f32.mrb[72].mxu0 }
 0x2e0   :  { %v2379_v1 = vadd.f32 %v3223_v54, %v4639_v42  ;;  %v2373_v37 = vpop.f32.mrb[73].mxu0 }
 0x2e1   :  { %v2374_v21 = vadd.f32 %v4639_v42, %v2373_v37 }
 0x2e2   :  { %2534 = vst.msk [vmem:[%s4968_s7 + $0x148] sm:$0xff] %vm2492_vm3, %v2379_v1 }
 0x2e3   :  { %2533 = vst.msk [vmem:[%s4968_s7 + $0x140] sm:$0xff] %vm2492_vm3, %v2374_v21  ;;  %v3226_v56 = vpop.f32.mrb[74].mxu0 }
 0x2e4   :  { %v2389_v30 = vadd.f32 %v3226_v56, %v4639_v42  ;;  %v2383_v41 = vpop.f32.mrb[75].mxu0 }
 0x2e5   :  { %v2384_v5 = vadd.f32 %v4639_v42, %v2383_v41 }
 0x2e6   :  { %2536 = vst.msk [vmem:[%s4968_s7 + $0x158] sm:$0xff] %vm2492_vm3, %v2389_v30 }
 0x2e7   :  { %2535 = vst.msk [vmem:[%s4968_s7 + $0x150] sm:$0xff] %vm2492_vm3, %v2384_v5  ;;  %v3229_v43 = vpop.f32.mrb[76].mxu0 }
 0x2e8   :  { %v2399_v27 = vadd.f32 %v3229_v43, %v4639_v42  ;;  %v2393_v4 = vpop.f32.mrb[77].mxu0 }
 0x2e9   :  { %v2394_v40 = vadd.f32 %v4639_v42, %v2393_v4 }
 0x2ea   :  { %2538 = vst.msk [vmem:[%s4968_s7 + $0x168] sm:$0xff] %vm2492_vm3, %v2399_v27 }
 0x2eb   :  { %2537 = vst.msk [vmem:[%s4968_s7 + $0x160] sm:$0xff] %vm2492_vm3, %v2394_v40  ;;  %v3232_v55 = vpop.f32.mrb[78].mxu0 }
 0x2ec   :  { %v2409_v61 = vadd.f32 %v3232_v55, %v4639_v42  ;;  %v2403_v62 = vpop.f32.mrb[79].mxu0 }
 0x2ed   :  { %v2404_v3 = vadd.f32 %v4639_v42, %v2403_v62 }
 0x2ee   :  { %2540 = vst.msk [vmem:[%s4968_s7 + $0x178] sm:$0xff] %vm2492_vm3, %v2409_v61 }
 0x2ef   :  { %2539 = vst.msk [vmem:[%s4968_s7 + $0x170] sm:$0xff] %vm2492_vm3, %v2404_v3  ;;  %v3235_v19 = vpop.f32.mrb[80].mxu0 }
 0x2f0   :  { %v2419_v50 = vadd.f32 %v3235_v19, %v4639_v42  ;;  %v2413_v32 = vpop.f32.mrb[81].mxu0 }
 0x2f1   :  { %v2414_v22 = vadd.f32 %v4639_v42, %v2413_v32 }
 0x2f2   :  { %2542 = vst.msk [vmem:[%s4968_s7 + $0x188] sm:$0xff] %vm2492_vm3, %v2419_v50 }
 0x2f3   :  { %2541 = vst.msk [vmem:[%s4968_s7 + $0x180] sm:$0xff] %vm2492_vm3, %v2414_v22  ;;  %v3238_v10 = vpop.f32.mrb[82].mxu0 }
 0x2f4   :  { %v2429_v14 = vadd.f32 %v3238_v10, %v4639_v42  ;;  %v2423_v51 = vpop.f32.mrb[83].mxu0 }
 0x2f5   :  { %v2424_v58 = vadd.f32 %v4639_v42, %v2423_v51 }
 0x2f6   :  { %2544 = vst.msk [vmem:[%s4968_s7 + $0x198] sm:$0xff] %vm2492_vm3, %v2429_v14 }
 0x2f7   :  { %2543 = vst.msk [vmem:[%s4968_s7 + $0x190] sm:$0xff] %vm2492_vm3, %v2424_v58  ;;  %v3241_v46 = vpop.f32.mrb[84].mxu0 }
 0x2f8   :  { %v2439_v38 = vadd.f32 %v3241_v46, %v4639_v42  ;;  %v2433_v31 = vpop.f32.mrb[85].mxu0 }
 0x2f9   :  { %v2434_v9 = vadd.f32 %v4639_v42, %v2433_v31 }
 0x2fa   :  { %2546 = vst.msk [vmem:[%s4968_s7 + $0x1a8] sm:$0xff] %vm2492_vm3, %v2439_v38 }
 0x2fb   :  { %2545 = vst.msk [vmem:[%s4968_s7 + $0x1a0] sm:$0xff] %vm2492_vm3, %v2434_v9  ;;  %v3244_v20 = vpop.f32.mrb[86].mxu0 }
 0x2fc   :  { %v2449_v15 = vadd.f32 %v3244_v20, %v4639_v42  ;;  %v2443_v26 = vpop.f32.mrb[87].mxu0 }
 0x2fd   :  { %v2444_v49 = vadd.f32 %v4639_v42, %v2443_v26 }
 0x2fe   :  { %2548 = vst.msk [vmem:[%s4968_s7 + $0x1b8] sm:$0xff] %vm2492_vm3, %v2449_v15 }
 0x2ff   :  { %2547 = vst.msk [vmem:[%s4968_s7 + $0x1b0] sm:$0xff] %vm2492_vm3, %v2444_v49  ;;  %v3247_v12 = vpop.f32.mrb[88].mxu0 }
 0x300   :  { %v2459_v0 = vadd.f32 %v3247_v12, %v4639_v42  ;;  %v2453_v6 = vpop.f32.mrb[89].mxu0 }
 0x301   :  { %v2454_v52 = vadd.f32 %v4639_v42, %v2453_v6 }
 0x302   :  { %2550 = vst.msk [vmem:[%s4968_s7 + $0x1c8] sm:$0xff] %vm2492_vm3, %v2459_v0 }
 0x303   :  { %2549 = vst.msk [vmem:[%s4968_s7 + $0x1c0] sm:$0xff] %vm2492_vm3, %v2454_v52  ;;  %v3250_v29 = vpop.f32.mrb[90].mxu0 }
 0x304   :  { %v2469_v57 = vadd.f32 %v3250_v29, %v4639_v42  ;;  %v2463_v63 = vpop.f32.mrb[91].mxu0 }
 0x305   :  { %v2464_v39 = vadd.f32 %v4639_v42, %v2463_v63 }
 0x306   :  { %2552 = vst.msk [vmem:[%s4968_s7 + $0x1d8] sm:$0xff] %vm2492_vm3, %v2469_v57 }
 0x307   :  { %2551 = vst.msk [vmem:[%s4968_s7 + $0x1d0] sm:$0xff] %vm2492_vm3, %v2464_v39  ;;  %v3253_v44 = vpop.f32.mrb[92].mxu0 }
 0x308   :  { %v2479_v17 = vadd.f32 %v3253_v44, %v4639_v42  ;;  %v2473_v8 = vpop.f32.mrb[93].mxu0 }
 0x309   :  { %v2474_v25 = vadd.f32 %v4639_v42, %v2473_v8 }
 0x30a   :  { %2554 = vst.msk [vmem:[%s4968_s7 + $0x1e8] sm:$0xff] %vm2492_vm3, %v2479_v17 }
 0x30b   :  { %2553 = vst.msk [vmem:[%s4968_s7 + $0x1e0] sm:$0xff] %vm2492_vm3, %v2474_v25  ;;  %v3256_v47 = vpop.f32.mrb[94].mxu0 }
 0x30c   :  { %v2489_v16 = vadd.f32 %v3256_v47, %v4639_v42  ;;  %v2483_v60 = vpop.f32.mrb[95].mxu0 }
 0x30d   :  { %v2484_v13 = vadd.f32 %v4639_v42, %v2483_v60 }
 0x30e   :  { %2556 = vst.msk [vmem:[%s4968_s7 + $0x1f8] sm:$0xff] %vm2492_vm3, %v2489_v16 }
 0x30f   :  { %2555 = vst.msk [vmem:[%s4968_s7 + $0x1f0] sm:$0xff] %vm2492_vm3, %v2484_v13 }

</bundles_post_ra>
